<compile_context>
chip_gen: v7x
topology: tpu7x:2x2x1
jax: 0.10.0
libtpu: 0.0.40
codegen_flags: <defaults>
</compile_context>

<pallas_src>
import functools

import jax
import jax.numpy as jnp
from jax import lax
from jax.experimental import pallas as pl
from jax.experimental.pallas import tpu as pltpu

EPS = 1e-5   # nn.BatchNorm2d default eps
LANE = 128


def _round_up(x, m):
    return (x + m - 1) // m * m


# -----------------------------------------------------------------------------------------
# Shared conv body:  acc[q, :] = sum_k  x[off_k : off_k + Q, :] @ w[k]   (f32 MXU accum).
# For a stride-1 conv on the row-major flattened padded sample, tap (kh, kw) is the
# contiguous row window starting at off = kh*Wp + kw, so no im2col / gather is needed.
# -----------------------------------------------------------------------------------------
def _accumulate_conv(x_ref, w_ref, acc_ref, *, offsets, q):
    acc_ref[...] = jnp.zeros_like(acc_ref)
    for k, off in enumerate(offsets):                       # static, fully unrolled
        acc_ref[...] += jnp.dot(x_ref[off:off + q, :], w_ref[k],
                                preferred_element_type=jnp.float32)


# ---------------- Pass 1: conv + per-sample channel sum / sum-of-squares ------------------
def conv_stats_kernel(x_ref, w_ref, mask_ref, sum_ref, sumsq_ref, acc_ref, *, offsets, q):
    # x_ref: (S_in, Kpad) bf16 (one flattened padded sample), w_ref: (KK, Kpad, Cpad) bf16,
    # mask_ref: (Q, 1) f32 (1.0 at real output positions, 0.0 at embedded garbage columns),
    # sum_ref / sumsq_ref: (1, Cpad) f32 per-sample partial statistics.
    _accumulate_conv(x_ref, w_ref, acc_ref, offsets=offsets, q=q)
    y = acc_ref[...] * mask_ref[...]                        # zero the garbage columns
    sum_ref[...] = jnp.sum(y, axis=0, keepdims=True)
    sumsq_ref[...] = jnp.sum(y * acc_ref[...], axis=0, keepdims=True)   # = sum(mask*y^2)


# ---------------- Pass 2: conv recompute + folded BatchNorm + ELU (fused store) -----------
def conv_bn_elu_kernel(x_ref, w_ref, scale_ref, shift_ref, out_ref, acc_ref, *,
                       offsets, q, cout):
    _accumulate_conv(x_ref, w_ref, acc_ref, offsets=offsets, q=q)
    z = acc_ref[...] * scale_ref[...] + shift_ref[...]      # folded BN (2 VPU ops/elem)
    z = jnp.where(z > 0, z, jnp.expm1(z))                   # ELU, alpha = 1.0
    out_ref[...] = z[:, :cout]                              # drop channel padding pre-store


# ---------------- plain-JAX glue -----------------------------------------------------------
def _im2col(x_nhwc, kh, kw, stride, padding):
    # Fallback prep for stride > 1 only: (N,H,W,Cin) -> (N, OH*OW, KH*KW*Cin), (kh,kw,cin).
    n, h, w, cin = x_nhwc.shape
    xp = jnp.pad(x_nhwc, ((0, 0), (padding, padding), (padding, padding), (0, 0)))
    oh = (h + 2 * padding - kh) // stride + 1
    ow = (w + 2 * padding - kw) // stride + 1
    cols = []
    for i in range(kh):
        for j in range(kw):
            patch = lax.slice(
                xp, (0, i, j, 0),
                (n, i + (oh - 1) * stride + 1, j + (ow - 1) * stride + 1, cin),
                (1, stride, stride, 1))
            cols.append(patch)
    col = jnp.stack(cols, axis=3)                           # (N, OH, OW, KH*KW, Cin)
    return col.reshape(n, oh * ow, kh * kw * cin), oh, ow


def conv_block(x_nchw, weight, bias, gamma, beta, *, stride, padding):
    """ConvBlock forward. x_nchw (N,Cin,H,W), weight (Cout,Cin,KH,KW) -- PyTorch layouts.

    `bias` is accepted for signature parity but intentionally unused: a per-channel constant
    added before training-mode BatchNorm is cancelled exactly by the mean subtraction.
    (It would matter only for running_mean/var buffer tracking, which we do not emit.)
    """
    del bias
    n, cin, h, w = x_nchw.shape
    cout, _, kh, kw = weight.shape

    x_nhwc = jnp.transpose(x_nchw, (0, 2, 3, 1)).astype(jnp.bfloat16)
    w_kkio = jnp.transpose(weight, (2, 3, 1, 0)).astype(jnp.bfloat16)   # (KH,KW,Cin,Cout)

    if stride == 1:
        # Fused path: pad spatially, flatten (Hp, Wp) row-major.  Q = OH*Wp embeds the
        # OH x OW outputs with (Wp - OW) garbage columns per row (masked / sliced away).
        hp, wp = h + 2 * padding, w + 2 * padding
        oh, ow = hp - kh + 1, wp - kw + 1
        xp = jnp.pad(x_nhwc, ((0, 0), (padding, padding), (padding, padding), (0, 0)))
        x_flat = xp.reshape(n, hp * wp, cin)
        # kw-1 extra zero rows so the last tap's row window stays in bounds.
        x_flat = jnp.pad(x_flat, ((0, 0), (0, kw - 1), (0, 0)))
        w3 = w_kkio.reshape(kh * kw, cin, cout)
        offsets = tuple(i * wp + j for i in range(kh) for j in range(kw))
        kdim = cin
    else:
        # TODO(synk): fused shifted-window path currently assumes stride == 1.
        x_flat, oh, ow = _im2col(x_nhwc, kh, kw, stride, padding)       # (N, OH*OW, K)
        wp = ow
        w3 = w_kkio.reshape(1, kh * kw * cin, cout)
        offsets = (0,)
        kdim = kh * kw * cin

    q = oh * wp                                   # embedded output rows per sample
    k_pad = _round_up(kdim, LANE)                 # lane-dense MXU feed (padded K is exact: 0s)
    c_pad = _round_up(cout, LANE)
    x_flat = jnp.pad(x_flat, ((0, 0), (0, 0), (0, k_pad - kdim)))
    w3 = jnp.pad(w3, ((0, 0), (0, k_pad - kdim), (0, c_pad - cout)))
    s_in = x_flat.shape[1]
    kk = w3.shape[0]

    # 1.0 at real output positions, 0.0 at the embedded garbage columns.
    col_mask = (jnp.arange(q) % wp < ow).astype(jnp.float32).reshape(q, 1)

    # Scoped-VMEM request: 32 MiB floor (plenty here), grow with the working set up to
    # 64 MiB (v7x physical); v5e/v6e (128 MiB) could go higher still for huge samples.
    est = (2 * s_in * k_pad * 2 + 2 * kk * k_pad * c_pad * 2
           + q * c_pad * 4 + 2 * q * max(cout, LANE) * 4 + 4 * q * LANE)
    vmem_limit = int(min(64 * 1024 * 1024, max(32 * 1024 * 1024, 4 * est)))
    cparams = pltpu.CompilerParams(dimension_semantics=("parallel",),
                                   vmem_limit_bytes=vmem_limit)

    x_spec = pl.BlockSpec((None, s_in, k_pad), lambda i: (i, 0, 0))
    w_spec = pl.BlockSpec((kk, k_pad, c_pad), lambda i: (0, 0, 0))      # VMEM-resident

    # ---- Pass 1: conv + per-sample partial (sum, sumsq); no y written to HBM -------------
    ch_sum, ch_sumsq = pl.pallas_call(
        functools.partial(conv_stats_kernel, offsets=offsets, q=q),
        grid=(n,),
        in_specs=[x_spec, w_spec, pl.BlockSpec((q, 1), lambda i: (0, 0))],
        out_specs=(pl.BlockSpec((None, 1, c_pad), lambda i: (i, 0, 0)),
                   pl.BlockSpec((None, 1, c_pad), lambda i: (i, 0, 0))),
        out_shape=(jax.ShapeDtypeStruct((n, 1, c_pad), jnp.float32),
                   jax.ShapeDtypeStruct((n, 1, c_pad), jnp.float32)),
        scratch_shapes=[pltpu.VMEM((q, c_pad), jnp.float32)],
        compiler_params=cparams,
    )(x_flat, w3, col_mask)

    # ---- Fold BN (training-mode, biased variance) into per-channel scale/shift -----------
    count = float(n * oh * ow)
    tot = jnp.sum(ch_sum[:, 0, :], axis=0)                  # combine per-sample partials
    totsq = jnp.sum(ch_sumsq[:, 0, :], axis=0)
    mean = tot / count
    # TODO(synk): E[y^2]-E[y]^2 in f32 can cancel for huge batches; per-sample partials
    # help, a shifted/Welford accumulation would be exact.
    var = jnp.maximum(totsq / count - mean * mean, 0.0)
    inv = lax.rsqrt(var + EPS)
    gamma_pad = jnp.pad(gamma.astype(jnp.float32), (0, c_pad - cout))
    beta_pad = jnp.pad(beta.astype(jnp.float32), (0, c_pad - cout))
    scale_v = gamma_pad * inv
    shift_v = beta_pad - mean * scale_v
    scale = scale_v.reshape(1, c_pad)
    shift = shift_v.reshape(1, c_pad)

    # ---- Pass 2: recompute conv, apply folded BN + ELU, store unpadded channels ----------
    out_emb = pl.pallas_call(
        functools.partial(conv_bn_elu_kernel, offsets=offsets, q=q, cout=cout),
        grid=(n,),
        in_specs=[x_spec, w_spec,
                  pl.BlockSpec((1, c_pad), lambda i: (0, 0)),
                  pl.BlockSpec((1, c_pad), lambda i: (0, 0))],
        out_specs=pl.BlockSpec((None, q, cout), lambda i: (i, 0, 0)),
        out_shape=jax.ShapeDtypeStruct((n, q, cout), jnp.float32),
        scratch_shapes=[pltpu.VMEM((q, c_pad), jnp.float32)],
        compiler_params=cparams,
    )(x_flat, w3, scale, shift)

    # Epilogue: drop embedded garbage columns, convert to NCHW.  One XLA copy over exactly
    # the logical output bytes (no c_pad amplification).
    out = out_emb.reshape(n, oh, wp, cout)[:, :, :ow, :]
    return jnp.transpose(out, (0, 3, 1, 2))


def _reference(x_nchw, weight, bias, gamma, beta, *, stride, padding):
    # Pure-JAX reference. Inputs are bf16-quantized (like the kernel's matmul operands)
    # so the comparison isolates the kernel logic rather than the bf16 cast itself.
    xq = x_nchw.astype(jnp.bfloat16).astype(jnp.float32)
    wq = weight.astype(jnp.bfloat16).astype(jnp.float32)
    y = lax.conv_general_dilated(
        xq, wq,
        window_strides=(stride, stride),
        padding=((padding, padding), (padding, padding)),
        dimension_numbers=("NCHW", "OIHW", "NCHW"),
    ) + bias.reshape(1, -1, 1, 1)
    mean = jnp.mean(y, axis=(0, 2, 3), keepdims=True)
    var = jnp.mean((y - mean) ** 2, axis=(0, 2, 3), keepdims=True)
    z = gamma.reshape(1, -1, 1, 1) * (y - mean) * lax.rsqrt(var + EPS) + beta.reshape(1, -1, 1, 1)
    return jnp.where(z > 0, z, jnp.expm1(z))


if __name__ == "__main__":
    # Small, module-consistent shapes.
    N, CIN, H, W = 2, 4, 16, 16
    COUT, KSIZE, STRIDE, PAD = 8, 3, 1, 1

    key = jax.random.PRNGKey(0)
    kx, kw_, kb = jax.random.split(key, 3)
    x = jax.random.normal(kx, (N, CIN, H, W), dtype=jnp.float32)
    weight = jax.random.normal(kw_, (COUT, CIN, KSIZE, KSIZE), dtype=jnp.float32) * 0.1
    bias = jax.random.normal(kb, (COUT,), dtype=jnp.float32) * 0.1
    gamma = jnp.ones((COUT,), dtype=jnp.float32)   # BatchNorm2d default weight init
    beta = jnp.zeros((COUT,), dtype=jnp.float32)   # BatchNorm2d default bias init

    out = conv_block(x, weight, bias, gamma, beta, stride=STRIDE, padding=PAD)
    out = jax.block_until_ready(out)

    ref = _reference(x, weight, bias, gamma, beta, stride=STRIDE, padding=PAD)
    assert out.shape == (N, COUT, H, W), out.shape
    max_err = float(jnp.max(jnp.abs(out - ref)))
    assert jnp.allclose(out, ref, atol=2e-3, rtol=2e-3), max_err

    print("KERNEL_OK")
</pallas_src>

<mosaic_0001>
module attributes {stable_mosaic.version = 11 : i64} {
  func.func @conv_stats_kernel(%arg0: i32, %arg1: memref<1x326x128xbf16, #tpu.memory_space<vmem>>, %arg2: memref<9x128x128xbf16, #tpu.memory_space<vmem>>, %arg3: memref<288x1xf32, #tpu.memory_space<vmem>>, %arg4: memref<1x1x128xf32, #tpu.memory_space<vmem>>, %arg5: memref<1x1x128xf32, #tpu.memory_space<vmem>>, %arg6: memref<288x128xf32, #tpu.memory_space<vmem>>) attributes {dimension_semantics = [#tpu.dimension_semantics<parallel>], iteration_bounds = array<i64: 2>, scalar_prefetch = 0 : i64, scratch_operands = 1 : i64, tpu.core_type = #tpu.core_type<tc>, window_params = [{transform_indices = @transform_0, window_bounds = array<i64: 1, 326, 128>}, {pipeline_mode = #tpu.pipeline_mode<synchronous>, transform_indices = @transform_1, window_bounds = array<i64: 9, 128, 128>}, {pipeline_mode = #tpu.pipeline_mode<synchronous>, transform_indices = @transform_2, window_bounds = array<i64: 288, 1>}, {transform_indices = @transform_3, window_bounds = array<i64: 1, 1, 128>}, {transform_indices = @transform_4, window_bounds = array<i64: 1, 1, 128>}]} {
    %cst = arith.constant 0.000000e+00 : f32
    %0 = vector.broadcast %cst : f32 to vector<288x128xf32>
    %c0 = arith.constant 0 : index
    %c0_0 = arith.constant 0 : index
    %1 = vector.load %arg6[%c0, %c0_0] : memref<288x128xf32, #tpu.memory_space<vmem>>, vector<288x128xf32>
    tpu.vector_store %arg6[%c0, %c0_0], %0 {strides = array<i32>} : memref<288x128xf32, #tpu.memory_space<vmem>>, vector<288x128xf32>,
    %c0_1 = arith.constant 0 : index
    %c0_2 = arith.constant 0 : index
    %2 = vector.load %arg6[%c0_1, %c0_2] : memref<288x128xf32, #tpu.memory_space<vmem>>, vector<288x128xf32>
    %c0_3 = arith.constant 0 : index
    %c0_4 = arith.constant 0 : index
    %c0_5 = arith.constant 0 : index
    %3 = vector.load %arg1[%c0_3, %c0_4, %c0_5] : memref<1x326x128xbf16, #tpu.memory_space<vmem>>, vector<1x288x128xbf16>
    %4 = vector.shape_cast %3 : vector<1x288x128xbf16> to vector<288x128xbf16>
    %c0_6 = arith.constant 0 : index
    %c0_7 = arith.constant 0 : index
    %c0_8 = arith.constant 0 : index
    %5 = vector.load %arg2[%c0_6, %c0_7, %c0_8] : memref<9x128x128xbf16, #tpu.memory_space<vmem>>, vector<1x128x128xbf16>
    %6 = vector.shape_cast %5 : vector<1x128x128xbf16> to vector<128x128xbf16>
    %cst_9 = arith.constant dense<0.000000e+00> : vector<288x128xf32>
    %7 = tpu.matmul %4, %6, %cst_9 {dimension_numbers = #tpu.dot_dimension_numbers<[1], [0], [0], [1], [0, 0, 1, 1], [], []>} : vector<288x128xbf16>, vector<128x128xbf16>, vector<288x128xf32> -> vector<288x128xf32>
    %8 = arith.addf %2, %7 : vector<288x128xf32>
    %c0_10 = arith.constant 0 : index
    %c0_11 = arith.constant 0 : index
    %9 = vector.load %arg6[%c0_10, %c0_11] : memref<288x128xf32, #tpu.memory_space<vmem>>, vector<288x128xf32>
    tpu.vector_store %arg6[%c0_10, %c0_11], %8 {strides = array<i32>} : memref<288x128xf32, #tpu.memory_space<vmem>>, vector<288x128xf32>,
    %c0_12 = arith.constant 0 : index
    %c0_13 = arith.constant 0 : index
    %10 = vector.load %arg6[%c0_12, %c0_13] : memref<288x128xf32, #tpu.memory_space<vmem>>, vector<288x128xf32>
    %c0_14 = arith.constant 0 : index
    %c1 = arith.constant 1 : index
    %c0_15 = arith.constant 0 : index
    %11 = vector.load %arg1[%c0_14, %c1, %c0_15] : memref<1x326x128xbf16, #tpu.memory_space<vmem>>, vector<1x288x128xbf16>
    %12 = vector.shape_cast %11 : vector<1x288x128xbf16> to vector<288x128xbf16>
    %c1_16 = arith.constant 1 : index
    %c0_17 = arith.constant 0 : index
    %c0_18 = arith.constant 0 : index
    %13 = vector.load %arg2[%c1_16, %c0_17, %c0_18] : memref<9x128x128xbf16, #tpu.memory_space<vmem>>, vector<1x128x128xbf16>
    %14 = vector.shape_cast %13 : vector<1x128x128xbf16> to vector<128x128xbf16>
    %cst_19 = arith.constant dense<0.000000e+00> : vector<288x128xf32>
    %15 = tpu.matmul %12, %14, %cst_19 {dimension_numbers = #tpu.dot_dimension_numbers<[1], [0], [0], [1], [0, 0, 1, 1], [], []>} : vector<288x128xbf16>, vector<128x128xbf16>, vector<288x128xf32> -> vector<288x128xf32>
    %16 = arith.addf %10, %15 : vector<288x128xf32>
    %c0_20 = arith.constant 0 : index
    %c0_21 = arith.constant 0 : index
    %17 = vector.load %arg6[%c0_20, %c0_21] : memref<288x128xf32, #tpu.memory_space<vmem>>, vector<288x128xf32>
    tpu.vector_store %arg6[%c0_20, %c0_21], %16 {strides = array<i32>} : memref<288x128xf32, #tpu.memory_space<vmem>>, vector<288x128xf32>,
    %c0_22 = arith.constant 0 : index
    %c0_23 = arith.constant 0 : index
    %18 = vector.load %arg6[%c0_22, %c0_23] : memref<288x128xf32, #tpu.memory_space<vmem>>, vector<288x128xf32>
    %c0_24 = arith.constant 0 : index
    %c2 = arith.constant 2 : index
    %c0_25 = arith.constant 0 : index
    %19 = vector.load %arg1[%c0_24, %c2, %c0_25] : memref<1x326x128xbf16, #tpu.memory_space<vmem>>, vector<1x288x128xbf16>
    %20 = vector.shape_cast %19 : vector<1x288x128xbf16> to vector<288x128xbf16>
    %c2_26 = arith.constant 2 : index
    %c0_27 = arith.constant 0 : index
    %c0_28 = arith.constant 0 : index
    %21 = vector.load %arg2[%c2_26, %c0_27, %c0_28] : memref<9x128x128xbf16, #tpu.memory_space<vmem>>, vector<1x128x128xbf16>
    %22 = vector.shape_cast %21 : vector<1x128x128xbf16> to vector<128x128xbf16>
    %cst_29 = arith.constant dense<0.000000e+00> : vector<288x128xf32>
    %23 = tpu.matmul %20, %22, %cst_29 {dimension_numbers = #tpu.dot_dimension_numbers<[1], [0], [0], [1], [0, 0, 1, 1], [], []>} : vector<288x128xbf16>, vector<128x128xbf16>, vector<288x128xf32> -> vector<288x128xf32>
    %24 = arith.addf %18, %23 : vector<288x128xf32>
    %c0_30 = arith.constant 0 : index
    %c0_31 = arith.constant 0 : index
    %25 = vector.load %arg6[%c0_30, %c0_31] : memref<288x128xf32, #tpu.memory_space<vmem>>, vector<288x128xf32>
    tpu.vector_store %arg6[%c0_30, %c0_31], %24 {strides = array<i32>} : memref<288x128xf32, #tpu.memory_space<vmem>>, vector<288x128xf32>,
    %c0_32 = arith.constant 0 : index
    %c0_33 = arith.constant 0 : index
    %26 = vector.load %arg6[%c0_32, %c0_33] : memref<288x128xf32, #tpu.memory_space<vmem>>, vector<288x128xf32>
    %c0_34 = arith.constant 0 : index
    %c18 = arith.constant 18 : index
    %c0_35 = arith.constant 0 : index
    %27 = vector.load %arg1[%c0_34, %c18, %c0_35] : memref<1x326x128xbf16, #tpu.memory_space<vmem>>, vector<1x288x128xbf16>
    %28 = vector.shape_cast %27 : vector<1x288x128xbf16> to vector<288x128xbf16>
    %c3 = arith.constant 3 : index
    %c0_36 = arith.constant 0 : index
    %c0_37 = arith.constant 0 : index
    %29 = vector.load %arg2[%c3, %c0_36, %c0_37] : memref<9x128x128xbf16, #tpu.memory_space<vmem>>, vector<1x128x128xbf16>
    %30 = vector.shape_cast %29 : vector<1x128x128xbf16> to vector<128x128xbf16>
    %cst_38 = arith.constant dense<0.000000e+00> : vector<288x128xf32>
    %31 = tpu.matmul %28, %30, %cst_38 {dimension_numbers = #tpu.dot_dimension_numbers<[1], [0], [0], [1], [0, 0, 1, 1], [], []>} : vector<288x128xbf16>, vector<128x128xbf16>, vector<288x128xf32> -> vector<288x128xf32>
    %32 = arith.addf %26, %31 : vector<288x128xf32>
    %c0_39 = arith.constant 0 : index
    %c0_40 = arith.constant 0 : index
    %33 = vector.load %arg6[%c0_39, %c0_40] : memref<288x128xf32, #tpu.memory_space<vmem>>, vector<288x128xf32>
    tpu.vector_store %arg6[%c0_39, %c0_40], %32 {strides = array<i32>} : memref<288x128xf32, #tpu.memory_space<vmem>>, vector<288x128xf32>,
    %c0_41 = arith.constant 0 : index
    %c0_42 = arith.constant 0 : index
    %34 = vector.load %arg6[%c0_41, %c0_42] : memref<288x128xf32, #tpu.memory_space<vmem>>, vector<288x128xf32>
    %c0_43 = arith.constant 0 : index
    %c19 = arith.constant 19 : index
    %c0_44 = arith.constant 0 : index
    %35 = vector.load %arg1[%c0_43, %c19, %c0_44] : memref<1x326x128xbf16, #tpu.memory_space<vmem>>, vector<1x288x128xbf16>
    %36 = vector.shape_cast %35 : vector<1x288x128xbf16> to vector<288x128xbf16>
    %c4 = arith.constant 4 : index
    %c0_45 = arith.constant 0 : index
    %c0_46 = arith.constant 0 : index
    %37 = vector.load %arg2[%c4, %c0_45, %c0_46] : memref<9x128x128xbf16, #tpu.memory_space<vmem>>, vector<1x128x128xbf16>
    %38 = vector.shape_cast %37 : vector<1x128x128xbf16> to vector<128x128xbf16>
    %cst_47 = arith.constant dense<0.000000e+00> : vector<288x128xf32>
    %39 = tpu.matmul %36, %38, %cst_47 {dimension_numbers = #tpu.dot_dimension_numbers<[1], [0], [0], [1], [0, 0, 1, 1], [], []>} : vector<288x128xbf16>, vector<128x128xbf16>, vector<288x128xf32> -> vector<288x128xf32>
    %40 = arith.addf %34, %39 : vector<288x128xf32>
    %c0_48 = arith.constant 0 : index
    %c0_49 = arith.constant 0 : index
    %41 = vector.load %arg6[%c0_48, %c0_49] : memref<288x128xf32, #tpu.memory_space<vmem>>, vector<288x128xf32>
    tpu.vector_store %arg6[%c0_48, %c0_49], %40 {strides = array<i32>} : memref<288x128xf32, #tpu.memory_space<vmem>>, vector<288x128xf32>,
    %c0_50 = arith.constant 0 : index
    %c0_51 = arith.constant 0 : index
    %42 = vector.load %arg6[%c0_50, %c0_51] : memref<288x128xf32, #tpu.memory_space<vmem>>, vector<288x128xf32>
    %c0_52 = arith.constant 0 : index
    %c20 = arith.constant 20 : index
    %c0_53 = arith.constant 0 : index
    %43 = vector.load %arg1[%c0_52, %c20, %c0_53] : memref<1x326x128xbf16, #tpu.memory_space<vmem>>, vector<1x288x128xbf16>
    %44 = vector.shape_cast %43 : vector<1x288x128xbf16> to vector<288x128xbf16>
    %c5 = arith.constant 5 : index
    %c0_54 = arith.constant 0 : index
    %c0_55 = arith.constant 0 : index
    %45 = vector.load %arg2[%c5, %c0_54, %c0_55] : memref<9x128x128xbf16, #tpu.memory_space<vmem>>, vector<1x128x128xbf16>
    %46 = vector.shape_cast %45 : vector<1x128x128xbf16> to vector<128x128xbf16>
    %cst_56 = arith.constant dense<0.000000e+00> : vector<288x128xf32>
    %47 = tpu.matmul %44, %46, %cst_56 {dimension_numbers = #tpu.dot_dimension_numbers<[1], [0], [0], [1], [0, 0, 1, 1], [], []>} : vector<288x128xbf16>, vector<128x128xbf16>, vector<288x128xf32> -> vector<288x128xf32>
    %48 = arith.addf %42, %47 : vector<288x128xf32>
    %c0_57 = arith.constant 0 : index
    %c0_58 = arith.constant 0 : index
    %49 = vector.load %arg6[%c0_57, %c0_58] : memref<288x128xf32, #tpu.memory_space<vmem>>, vector<288x128xf32>
    tpu.vector_store %arg6[%c0_57, %c0_58], %48 {strides = array<i32>} : memref<288x128xf32, #tpu.memory_space<vmem>>, vector<288x128xf32>,
    %c0_59 = arith.constant 0 : index
    %c0_60 = arith.constant 0 : index
    %50 = vector.load %arg6[%c0_59, %c0_60] : memref<288x128xf32, #tpu.memory_space<vmem>>, vector<288x128xf32>
    %c0_61 = arith.constant 0 : index
    %c36 = arith.constant 36 : index
    %c0_62 = arith.constant 0 : index
    %51 = vector.load %arg1[%c0_61, %c36, %c0_62] : memref<1x326x128xbf16, #tpu.memory_space<vmem>>, vector<1x288x128xbf16>
    %52 = vector.shape_cast %51 : vector<1x288x128xbf16> to vector<288x128xbf16>
    %c6 = arith.constant 6 : index
    %c0_63 = arith.constant 0 : index
    %c0_64 = arith.constant 0 : index
    %53 = vector.load %arg2[%c6, %c0_63, %c0_64] : memref<9x128x128xbf16, #tpu.memory_space<vmem>>, vector<1x128x128xbf16>
    %54 = vector.shape_cast %53 : vector<1x128x128xbf16> to vector<128x128xbf16>
    %cst_65 = arith.constant dense<0.000000e+00> : vector<288x128xf32>
    %55 = tpu.matmul %52, %54, %cst_65 {dimension_numbers = #tpu.dot_dimension_numbers<[1], [0], [0], [1], [0, 0, 1, 1], [], []>} : vector<288x128xbf16>, vector<128x128xbf16>, vector<288x128xf32> -> vector<288x128xf32>
    %56 = arith.addf %50, %55 : vector<288x128xf32>
    %c0_66 = arith.constant 0 : index
    %c0_67 = arith.constant 0 : index
    %57 = vector.load %arg6[%c0_66, %c0_67] : memref<288x128xf32, #tpu.memory_space<vmem>>, vector<288x128xf32>
    tpu.vector_store %arg6[%c0_66, %c0_67], %56 {strides = array<i32>} : memref<288x128xf32, #tpu.memory_space<vmem>>, vector<288x128xf32>,
    %c0_68 = arith.constant 0 : index
    %c0_69 = arith.constant 0 : index
    %58 = vector.load %arg6[%c0_68, %c0_69] : memref<288x128xf32, #tpu.memory_space<vmem>>, vector<288x128xf32>
    %c0_70 = arith.constant 0 : index
    %c37 = arith.constant 37 : index
    %c0_71 = arith.constant 0 : index
    %59 = vector.load %arg1[%c0_70, %c37, %c0_71] : memref<1x326x128xbf16, #tpu.memory_space<vmem>>, vector<1x288x128xbf16>
    %60 = vector.shape_cast %59 : vector<1x288x128xbf16> to vector<288x128xbf16>
    %c7 = arith.constant 7 : index
    %c0_72 = arith.constant 0 : index
    %c0_73 = arith.constant 0 : index
    %61 = vector.load %arg2[%c7, %c0_72, %c0_73] : memref<9x128x128xbf16, #tpu.memory_space<vmem>>, vector<1x128x128xbf16>
    %62 = vector.shape_cast %61 : vector<1x128x128xbf16> to vector<128x128xbf16>
    %cst_74 = arith.constant dense<0.000000e+00> : vector<288x128xf32>
    %63 = tpu.matmul %60, %62, %cst_74 {dimension_numbers = #tpu.dot_dimension_numbers<[1], [0], [0], [1], [0, 0, 1, 1], [], []>} : vector<288x128xbf16>, vector<128x128xbf16>, vector<288x128xf32> -> vector<288x128xf32>
    %64 = arith.addf %58, %63 : vector<288x128xf32>
    %c0_75 = arith.constant 0 : index
    %c0_76 = arith.constant 0 : index
    %65 = vector.load %arg6[%c0_75, %c0_76] : memref<288x128xf32, #tpu.memory_space<vmem>>, vector<288x128xf32>
    tpu.vector_store %arg6[%c0_75, %c0_76], %64 {strides = array<i32>} : memref<288x128xf32, #tpu.memory_space<vmem>>, vector<288x128xf32>,
    %c0_77 = arith.constant 0 : index
    %c0_78 = arith.constant 0 : index
    %66 = vector.load %arg6[%c0_77, %c0_78] : memref<288x128xf32, #tpu.memory_space<vmem>>, vector<288x128xf32>
    %c0_79 = arith.constant 0 : index
    %c38 = arith.constant 38 : index
    %c0_80 = arith.constant 0 : index
    %67 = vector.load %arg1[%c0_79, %c38, %c0_80] : memref<1x326x128xbf16, #tpu.memory_space<vmem>>, vector<1x288x128xbf16>
    %68 = vector.shape_cast %67 : vector<1x288x128xbf16> to vector<288x128xbf16>
    %c8 = arith.constant 8 : index
    %c0_81 = arith.constant 0 : index
    %c0_82 = arith.constant 0 : index
    %69 = vector.load %arg2[%c8, %c0_81, %c0_82] : memref<9x128x128xbf16, #tpu.memory_space<vmem>>, vector<1x128x128xbf16>
    %70 = vector.shape_cast %69 : vector<1x128x128xbf16> to vector<128x128xbf16>
    %cst_83 = arith.constant dense<0.000000e+00> : vector<288x128xf32>
    %71 = tpu.matmul %68, %70, %cst_83 {dimension_numbers = #tpu.dot_dimension_numbers<[1], [0], [0], [1], [0, 0, 1, 1], [], []>} : vector<288x128xbf16>, vector<128x128xbf16>, vector<288x128xf32> -> vector<288x128xf32>
    %72 = arith.addf %66, %71 : vector<288x128xf32>
    %c0_84 = arith.constant 0 : index
    %c0_85 = arith.constant 0 : index
    %73 = vector.load %arg6[%c0_84, %c0_85] : memref<288x128xf32, #tpu.memory_space<vmem>>, vector<288x128xf32>
    tpu.vector_store %arg6[%c0_84, %c0_85], %72 {strides = array<i32>} : memref<288x128xf32, #tpu.memory_space<vmem>>, vector<288x128xf32>,
    %c0_86 = arith.constant 0 : index
    %c0_87 = arith.constant 0 : index
    %74 = vector.load %arg6[%c0_86, %c0_87] : memref<288x128xf32, #tpu.memory_space<vmem>>, vector<288x128xf32>
    %c0_88 = arith.constant 0 : index
    %c0_89 = arith.constant 0 : index
    %75 = vector.load %arg3[%c0_88, %c0_89] : memref<288x1xf32, #tpu.memory_space<vmem>>, vector<288x1xf32>
    %76 = vector.broadcast %75 : vector<288x1xf32> to vector<288x128xf32>
    %77 = arith.mulf %74, %76 : vector<288x128xf32>
    %cst_90 = arith.constant dense<0.000000e+00> : vector<128xf32>
    %78 = vector.multi_reduction <add>, %77, %cst_90 [0] : vector<288x128xf32> to vector<128xf32>
    %79 = vector.shape_cast %78 : vector<128xf32> to vector<1x128xf32>
    %c0_91 = arith.constant 0 : index
    %c0_92 = arith.constant 0 : index
    %c0_93 = arith.constant 0 : index
    %80 = vector.load %arg4[%c0_91, %c0_92, %c0_93] : memref<1x1x128xf32, #tpu.memory_space<vmem>>, vector<1x1x128xf32>
    %81 = vector.shape_cast %80 : vector<1x1x128xf32> to vector<1x128xf32>
    %82 = vector.shape_cast %79 : vector<1x128xf32> to vector<1x1x128xf32>
    tpu.vector_store %arg4[%c0_91, %c0_92, %c0_93], %82 {strides = array<i32>} : memref<1x1x128xf32, #tpu.memory_space<vmem>>, vector<1x1x128xf32>,
    %c0_94 = arith.constant 0 : index
    %c0_95 = arith.constant 0 : index
    %83 = vector.load %arg6[%c0_94, %c0_95] : memref<288x128xf32, #tpu.memory_space<vmem>>, vector<288x128xf32>
    %84 = arith.mulf %77, %83 : vector<288x128xf32>
    %cst_96 = arith.constant dense<0.000000e+00> : vector<128xf32>
    %85 = vector.multi_reduction <add>, %84, %cst_96 [0] : vector<288x128xf32> to vector<128xf32>
    %86 = vector.shape_cast %85 : vector<128xf32> to vector<1x128xf32>
    %c0_97 = arith.constant 0 : index
    %c0_98 = arith.constant 0 : index
    %c0_99 = arith.constant 0 : index
    %87 = vector.load %arg5[%c0_97, %c0_98, %c0_99] : memref<1x1x128xf32, #tpu.memory_space<vmem>>, vector<1x1x128xf32>
    %88 = vector.shape_cast %87 : vector<1x1x128xf32> to vector<1x128xf32>
    %89 = vector.shape_cast %86 : vector<1x128xf32> to vector<1x1x128xf32>
    tpu.vector_store %arg5[%c0_97, %c0_98, %c0_99], %89 {strides = array<i32>} : memref<1x1x128xf32, #tpu.memory_space<vmem>>, vector<1x1x128xf32>,
    return
  }
  func.func @transform_0(%arg0: i32) -> (i32, i32, i32) {
    %c0_i32 = arith.constant 0 : i32
    %c0_i32_0 = arith.constant 0 : i32
    %c0_i32_1 = arith.constant 0 : i32
    return %arg0, %c0_i32, %c0_i32_0 : i32, i32, i32
  }
  func.func @transform_1(%arg0: i32) -> (i32, i32, i32) {
    %c0_i32 = arith.constant 0 : i32
    %c0_i32_0 = arith.constant 0 : i32
    %c0_i32_1 = arith.constant 0 : i32
    %c0_i32_2 = arith.constant 0 : i32
    return %c0_i32, %c0_i32_0, %c0_i32_1 : i32, i32, i32
  }
  func.func @transform_2(%arg0: i32) -> (i32, i32) {
    %c0_i32 = arith.constant 0 : i32
    %c0_i32_0 = arith.constant 0 : i32
    %c0_i32_1 = arith.constant 0 : i32
    return %c0_i32, %c0_i32_0 : i32, i32
  }
  func.func @transform_3(%arg0: i32) -> (i32, i32, i32) {
    %c0_i32 = arith.constant 0 : i32
    %c0_i32_0 = arith.constant 0 : i32
    %c0_i32_1 = arith.constant 0 : i32
    return %arg0, %c0_i32, %c0_i32_0 : i32, i32, i32
  }
  func.func @transform_4(%arg0: i32) -> (i32, i32, i32) {
    %c0_i32 = arith.constant 0 : i32
    %c0_i32_0 = arith.constant 0 : i32
    %c0_i32_1 = arith.constant 0 : i32
    return %arg0, %c0_i32, %c0_i32_0 : i32, i32, i32
  }
}

</mosaic_0001>

<bundles_post_ra>
// kernel: tpu_custom_call.1
= control target key start
LH: loop header
LB: loop body
LE: loop exit
PB: predicated region body
PF: predicated region fallthrough
CT: control target
= control target key end

     0   :  { %10 = vsyncpa [#allocation4], 0  ;;  %s8688_s0 = inlined_call_operand.vmem [shape: bf16[2,326,128], index: 0, kind: input, shape index: {}]   ;;  %s8689_s1 = inlined_call_operand.vmem [shape: bf16[9,128,128], index: 1, kind: input, shape index: {}]   ;;  %s8690_s2 = inlined_call_operand.vmem [shape: f32[288,1], index: 2, kind: input, shape index: {}]   ;;  %s8691_s3 = inlined_call_operand.hbm [shape: f32[2,1,128], index: 3, kind: output, shape index: {0}]   ;;  %s8692_s4 = inlined_call_operand.hbm [shape: f32[2,1,128], index: 4, kind: output, shape index: {1}]  }
   0x1   :  { %12 = vsyncpa [#allocation4 + $0x1], 0 }
   0x2   :  { %13 = vsyncpa [#allocation6], 0 }
   0x3   :  { %15 = vsyncpa [#allocation6 + $0x1], 0  ;;  %s7762_s15 = smov 0   ;;  %s7764_s16 = smov 0  }
   0x4   :  { %s7766_s17 = smov 0   ;;  %s7768_s18 = smov 0  }
   0x5 LB: > { %s7783_s19 = sadd.s32 4294967295, %s7732_s18   ;;  %s5955_s20 = sadd.s32 4294967294, %s7732_s18   ;;  %s7732_s18 = sphi %s7768_s18, %s8698_s18   ;;  %s7728_s17 = sphi %s7766_s17, %s8697_s17   ;;  %s7724_s16 = sphi %s7764_s16, %s8696_s16   ;;  %s7720_s15 = sphi %s7762_s15, %s8695_s15  }
   0x6   : > { %s7787_s21 = sadd.s32 1, %s7732_s18   ;;  %s96_s22 = sadd.s32 1, %s7728_s17 }
   0x7   : > { %s93_s23 = ssub.s32 %s7732_s18, %s7787_s21  ;;  %p106_p0 = scmp.ne.s32.totalorder %s7728_s17, %s7724_s16 }
   0x8   : > { %p94_p1 = scmp.eq.s32.totalorder %s93_s23, 0  ;;  %p107_p2 = scmp.eq.s32.totalorder %s7783_s19, 1 }
   0x9   : > { %p112_p3 = scmp.ne.s32.totalorder %s7724_s16, %s7720_s15  ;;  %p113_p4 = scmp.eq.s32.totalorder %s5955_s20, 1 }
   0xa   : > { %s7798_s24 = scalar_select %p94_p1, %s7728_s17, %s96_s22  }
   0xb   : > { %p7800_p5 = por %p107_p2, %p106_p0  ;;  %p7804_p6 = por %p113_p4, %p112_p3 }
   0xc   : > { %p5958_p7 = scmp.ge.s32.totalorder %s7732_s18, 1  ;;  %p171_p8 = scmp.lt.s32.totalorder %s7732_s18, 3 }
   0xe   : > { %p172_p9 = pnand %p5958_p7, %p171_p8 }
   0xf   : > { %v7388_v0 = vld [vmem:[%s8689_s1] sm:$0xff] (!%p172_p9)   ;;  %v7390_v2 = vld [vmem:[%s8689_s1 + $0x8] sm:$0xff] (!%p172_p9)   ;;  %p200_p10 = scmp.lt.s32.totalorder (!%p172_p9), %s7783_s19, 1  ;;  %v7392_v4 = vld [vmem:[%s8689_s1 + $0x10] sm:$0xff] (!%p172_p9)   ;;  %vm2636_vm0 = vsmask.f32 (!%p172_p9), 6400 }
  0x10   : > { %175 = sbr.rel (%p172_p9) target bundleno = 642 (0x282), region = 32  ;;  %v7389_v1 = vld [vmem:[%s8689_s1 + $0x100] sm:$0xff] (!%p172_p9)   ;;  %6568 = vmatprep.subr.bf16.mxu1 (!%p172_p9), %v7388_v0  ;;  %v7391_v3 = vld [vmem:[%s8689_s1 + $0x108] sm:$0xff] (!%p172_p9)   ;;  %v7393_v5 = vld [vmem:[%s8689_s1 + $0x110] sm:$0xff] (!%p172_p9)   ;;  %vm3305_vm1 = vcmask (!%p172_p9), 1045504   ;;  %vm1565_vm3 = vcmask (!%p172_p9), 1046528  }
  0x11   : > { %6776 = vmatprep.subr.bf16.mxu0 (!%p172_p9), %v7389_v1  ;;  %6569 = vmatpush3.bf16.msra.mxu1 (!%p172_p9), %v7388_v0  ;;  %v7394_v6 = vld [vmem:[%s8689_s1 + $0x18] sm:$0xff] (!%p172_p9)   ;;  %v7396_v8 = vld [vmem:[%s8689_s1 + $0x20] sm:$0xff] (!%p172_p9)   ;;  %v7398_v10 = vld [vmem:[%s8689_s1 + $0x28] sm:$0xff] (!%p172_p9)   ;;  %vm918_vm2 = vsmask.f32 (!%p172_p9), 7424  ;;  %vm5045_vm5 = vcmask (!%p172_p9), 1044480  }
  0x12   : > { %6777 = vmatpush3.bf16.msra.mxu0 (!%p172_p9), %v7389_v1  ;;  %6570 = vmatprep.subr.bf16.mxu1 (!%p172_p9), %v7390_v2  ;;  %v7395_v7 = vld [vmem:[%s8689_s1 + $0x118] sm:$0xff] (!%p172_p9)   ;;  %v7397_v9 = vld [vmem:[%s8689_s1 + $0x120] sm:$0xff] (!%p172_p9)   ;;  %v7399_v11 = vld [vmem:[%s8689_s1 + $0x128] sm:$0xff] (!%p172_p9)   ;;  %vm4376_vm4 = vsmask.f32 (!%p172_p9), 5376  ;;  %s7735_s8 = smov (!%p172_p9), [#allocation3]  }
  0x13   : > { %6778 = vmatprep.subr.bf16.mxu0 (!%p172_p9), %v7391_v3  ;;  %v7400_v15 = vld [vmem:[%s8689_s1 + $0x30] sm:$0xff] (!%p172_p9)   ;;  %v7402_v26 = vld [vmem:[%s8689_s1 + $0x38] sm:$0xff] (!%p172_p9)   ;;  %v7408_v33 = vld [vmem:[%s8689_s1 + $0x40] sm:$0xff] (!%p172_p9)   ;;  %s7642_s9 = sshll.u32 (!%p172_p9), %s7735_s8, 4  ;;  %s7643_s9 = int_to_ptr.vmem [resolvable:$false] %s7642_s9 }
  0x14   : > { %v7401_v16 = vld [vmem:[%s8689_s1 + $0x130] sm:$0xff] (!%p172_p9)   ;;  %v7403_v29 = vld [vmem:[%s8689_s1 + $0x138] sm:$0xff] (!%p172_p9)   ;;  %v7410_v39 = vld [vmem:[%s8689_s1 + $0x140] sm:$0xff] (!%p172_p9)   ;;  %s7644_s10 = scalar_lea.vmem (!%p172_p9), %s7643_s9, 32 }
  0x15   : > { %6571 = vmatpush3.bf16.msra.mxu1 (!%p172_p9), %v7390_v2  ;;  %v7411_v43 = vld [vmem:[%s8689_s1 + $0x148] sm:$0xff] (!%p172_p9)   ;;  %v7416_v58 = vld [vmem:[%s8689_s1 + $0x150] sm:$0xff] (!%p172_p9)  }
  0x16   : > { %6779 = vmatpush3.bf16.msra.mxu0 (!%p172_p9), %v7391_v3  ;;  %6572 = vmatprep.subr.bf16.mxu1 (!%p172_p9), %v7392_v4  ;;  %v7417_v52 = vld [vmem:[%s8689_s1 + $0x48] sm:$0xff] (!%p172_p9)   ;;  %v7424_v1 = vld [vmem:[%s8689_s1 + $0x50] sm:$0xff] (!%p172_p9)  }
  0x17   : > { %s201_s13 = scalar_select %p200_p10, %s7783_s19, 1  ;;  %6780 = vmatprep.subr.bf16.mxu0 %v7393_v5 }
  0x19   : > { %6573 = vmatpush3.bf16.msra.mxu1 %v7392_v4  ;;  %s7340_s27 = smul.u32 164, %s201_s13  ;;  %s6330_s13 = sshll.u32 %s7783_s19, 4 }
  0x1a   : > { %6781 = vmatpush3.bf16.msra.mxu0 %v7393_v5  ;;  %6574 = vmatprep.subr.bf16.mxu1 %v7394_v6  ;;  %v7418_v5 = vld [vmem:[%s8689_s1 + $0x158] sm:$0xff]   ;;  %s8614_s29 = scalar_lea.hbm %s8691_s3, %s6330_s13  ;;  %s8621_s5 = scalar_lea.hbm %s8692_s4, %s6330_s13 }
  0x1b   : > { %6782 = vmatprep.subr.bf16.mxu0 %v7395_v7  ;;  %s7851_s12 = scalar_lea.vmem %s8688_s0, %s7340_s27 }
  0x1c   : > { %v7404_v12 = vld [vmem:[%s7851_s12] sm:$0xff]   ;;  %v7405_v13 = vld [vmem:[%s7851_s12 + $0x8] sm:$0xfe]   ;;  %v7406_v14 = vld [vmem:[%s7851_s12 + $0x10] sm:$0xff]  }
  0x1d   : > { %6575 = vmatpush3.bf16.msra.mxu1 %v7394_v6  ;;  %6584 = vmatprep.mubr.bf16.mxu1 %v7404_v12  ;;  %v2638_v17 = vshrl.u32 %v7405_v13, 16  ;;  %v2641_v18 = vshll.u32 %v7405_v13, 16  ;;  %v2646_v19 = vshrl.u32 %v7406_v14, 16  ;;  %v2649_v20 = vshll.u32 %v7406_v14, 16  ;;  %v7409_v25 = vld [vmem:[%s7851_s12 + $0x18] sm:$0xff]   ;;  %v7413_v36 = vld [vmem:[%s7851_s12 + $0x20] sm:$0xff]  }
  0x1e   : > { %6783 = vmatpush3.bf16.msra.mxu0 %v7395_v7  ;;  %6576 = vmatprep.subr.bf16.mxu1 %v7396_v8  ;;  %v2655_v30 = vshrl.u32 %v7409_v25, 16  ;;  %v2658_v31 = vshll.u32 %v7409_v25, 16  ;;  %v7407_v37 = vld [vmem:[%s7851_s12 + $0x8] sm:$0xff]   ;;  %v2664_v40 = vshrl.u32 %v7413_v36, 16  ;;  %v2667_v41 = vshll.u32 %v7413_v36, 16  ;;  %v7412_v48 = vld [vmem:[%s7851_s12 + $0x10] sm:$0xff]  }
  0x1f   : > { %6784 = vmatprep.subr.bf16.mxu0 %v7397_v9  ;;  %v2640_v21 = vrot.slane %v2638_v17, 1  ;;  %v2643_v22 = vrot.slane %v2641_v18, 2  ;;  %v2648_v23 = vrot.slane %v2646_v19, 1  ;;  %v2651_v24 = vrot.slane %v2649_v20, 2  ;;  %v7415_v42 = vld [vmem:[%s7851_s12 + $0x28] sm:$0xff]   ;;  %v7420_v54 = vld [vmem:[%s7851_s12 + $0x30] sm:$0xff]  }
  0x20   : > { %v2657_v34 = vrot.slane %v2655_v30, 1  ;;  %v2660_v35 = vrot.slane %v2658_v31, 2  ;;  %v2666_v44 = vrot.slane %v2664_v40, 1  ;;  %v2669_v45 = vrot.slane %v2667_v41, 2  ;;  %v7414_v56 = vld [vmem:[%s7851_s12 + $0x18] sm:$0xff]   ;;  %v7419_v2 = vld [vmem:[%s7851_s12 + $0x20] sm:$0xff]  }
  0x21   : > { %6577 = vmatpush3.bf16.msra.mxu1 %v7396_v8  ;;  %v2644_v27 = vor.u32 %v2643_v22, %v2640_v21  ;;  %v2652_v28 = vor.u32 %v2651_v24, %v2648_v23  ;;  %v2673_v46 = vshrl.u32 %v7415_v42, 16  ;;  %v2676_v49 = vshll.u32 %v7415_v42, 16  ;;  %v7422_v61 = vld [vmem:[%s7851_s12 + $0x38] sm:$0xff]   ;;  %v7421_v13 = vld [vmem:[%s7851_s12 + $0x28] sm:$0xff]   ;;  %v7426_v22 = vld [vmem:[%s7851_s12 + $0x30] sm:$0xff]  }
  0x22   : > { %6785 = vmatpush3.bf16.msra.mxu0 %v7397_v9  ;;  %6578 = vmatprep.subr.bf16.mxu1 %v7398_v10  ;;  %v2661_v38 = vor.u32 %v2660_v35, %v2657_v34  ;;  %v2670_v50 = vor.u32 %v2669_v45, %v2666_v44  ;;  %v2682_v59 = vshrl.u32 %v7420_v54, 16  ;;  %v2685_v60 = vshll.u32 %v7420_v54, 16  ;;  %v7427_v9 = vld [vmem:[%s7851_s12 + $0x40] sm:$0xff]   ;;  %v7431_v19 = vld [vmem:[%s8689_s1 + $0x58] sm:$0xff]   ;;  %v7425_v25 = vld [vmem:[%s8689_s1 + $0x168] sm:$0xff]  }
  0x23   : > { %6786 = vmatprep.subr.bf16.mxu0 %v7399_v11  ;;  %v2653_v32 = vsel %vm2636_vm0, %v2644_v27, %v2652_v28  ;;  %v2675_v51 = vrot.slane %v2673_v46, 1  ;;  %v2678_v53 = vrot.slane %v2676_v49, 2  ;;  %v2691_v0 = vshrl.u32 %v7422_v61, 16  ;;  %v7434_v30 = vld [vmem:[%s7851_s12 + $0x8] sm:$0xfc]   ;;  %v7438_v35 = vld [vmem:[%s8689_s1 + $0x60] sm:$0xff]  }
  0x24   : > { %6792 = vmatprep.mubr.bf16.mxu0 %v2653_v32  ;;  %v2662_v47 = vsel %vm2636_vm0, %v2652_v28, %v2661_v38  ;;  %v2671_v55 = vsel %vm2636_vm0, %v2661_v38, %v2670_v50  ;;  %v2684_v62 = vrot.slane %v2682_v59, 1  ;;  %v2687_v63 = vrot.slane %v2685_v60, 2  ;;  %v7435_v28 = vld [vmem:[%s7851_s12 + $0x10] sm:$0xff]   ;;  %v7428_v36 = vld [vmem:[%s7851_s12 + $0x38] sm:$0xff]   ;;  %v7433_v38 = vld [vmem:[%s7851_s12 + $0x40] sm:$0xff]  }
  0x25   : > { %6579 = vmatpush3.bf16.msra.mxu1 %v7398_v10  ;;  %v2679_v57 = vor.u32 %v2678_v53, %v2675_v51  ;;  %v2694_v3 = vshll.u32 %v7422_v61, 16  ;;  %v2693_v7 = vrot.slane %v2691_v0, 1  ;;  %v2703_v12 = vshll.u32 %v7427_v9, 16  ;;  %v7430_v32 = vld [vmem:[%s8689_s1 + $0x170] sm:$0xff]   ;;  %v7437_v40 = vld [vmem:[%s7851_s12 + $0x18] sm:$0xff]   ;;  %v7440_v42 = vld [vmem:[%s7851_s12 + $0x20] sm:$0xff]  }
  0x26   : > { %6787 = vmatpush3.bf16.msra.mxu0 %v7399_v11  ;;  %6580 = vmatprep.subr.bf16.mxu1 %v7400_v15  ;;  %v2688_v6 = vor.u32 %v2687_v63, %v2684_v62  ;;  %v2700_v11 = vshrl.u32 %v7427_v9, 16  ;;  %v3306_v34 = vrot.slane %v7434_v30, 2  ;;  %v7436_v44 = vld [vmem:[%s7851_s12 + $0x48] sm:$0xff]   ;;  %v3309_v45 = vrot.slane %v7437_v40, 2  ;;  %v7439_v46 = vld [vmem:[%s7851_s12 + $0x50] sm:$0xff]   ;;  %v7448_v60 = vld [vmem:[%s7851_s12 + $0x38] sm:$0xff]  }
  0x27   : > { %6788 = vmatprep.subr.bf16.mxu0 %v7401_v16  ;;  %v2680_v4 = vsel %vm2636_vm0, %v2670_v50, %v2679_v57  ;;  %v2696_v8 = vrot.slane %v2694_v3, 2  ;;  %v2705_v18 = vrot.slane %v2703_v12, 2  ;;  %v7442_v49 = vld [vmem:[%s7851_s12 + $0x28] sm:$0xff]   ;;  %v7446_v50 = vld [vmem:[%s7851_s12 + $0x30] sm:$0xff]   ;;  %v7457_v62 = vld [vmem:[%s8689_s1 + $0x78] sm:$0xff]  }
  0x28   : > { %v2689_v10 = vsel %vm2636_vm0, %v2679_v57, %v2688_v6  ;;  %v2702_v17 = vrot.slane %v2700_v11, 1  ;;  %v7450_v54 = vld [vmem:[%s8689_s1 + $0x70] sm:$0xff]   ;;  %v7445_v57 = vld [vmem:[%s7851_s12 + $0x60] sm:$0xff]  }
  0x29   : > { %6581 = vmatpush3.bf16.msra.mxu1 %v7400_v15  ;;  %v2697_v14 = vor.u32 %v2696_v8, %v2693_v7  ;;  %v7429_v15 = vld [vmem:[%s7851_s12 + $0x48] sm:$0xff]   ;;  %v7455_v59 = vld [vmem:[%s8689_s1 + $0x190] sm:$0xff]   ;;  %v7452_v0 = vld [vmem:[%s7851_s12 + $0x40] sm:$0xff]  }
  0x2a   : > { %6789 = vmatpush3.bf16.msra.mxu0 %v7401_v16  ;;  %6582 = vmatprep.subr.bf16.mxu1 %v7402_v26  ;;  %v7423_v16 = vld [vmem:[%s8689_s1 + $0x160] sm:$0xff]   ;;  %v2709_v20 = vshrl.u32 %v7429_v15, 16  ;;  %v2712_v21 = vshll.u32 %v7429_v15, 16  ;;  %v2706_v23 = vor.u32 %v2705_v18, %v2702_v17  ;;  %v3319_v3 = vrot.slane %v7452_v0, 2  ;;  %v7458_v8 = vld [vmem:[%s7851_s12 + $0x50] sm:$0xff]   ;;  %v7453_v17 = vld [vmem:[%s7851_s12 + $0x78] sm:$0xff]  }
  0x2b   : > { %6790 = vmatprep.subr.bf16.mxu0 %v7403_v29  ;;  %v2698_v24 = vsel %vm2636_vm0, %v2688_v6, %v2697_v14  ;;  %v7454_v6 = vld [vmem:[%s7851_s12 + $0x48] sm:$0xff]   ;;  %v7462_v9 = vld [vmem:[%s7851_s12] sm:$0xff]  }
  0x2c   : > { %v2714_v27 = vrot.slane %v2712_v21, 2  ;;  %v7981_v11 = vld [vmem:[%s8689_s1 + $0x80] sm:$0xff]   ;;  %v3321_v12 = vrot.slane %v7454_v6, 2  ;;  %v7473_v0 = vld [vmem:[%s8689_s1 + $0x88] sm:$0xff]  }
  0x2d   : > { %6583 = vmatpush3.bf16.msra.mxu1 %v7402_v26  ;;  %v2711_v26 = vrot.slane %v2709_v20, 1  ;;  %v7468_v15 = vld [vmem:[%s8689_s1 + $0x1a0] sm:$0xff]   ;;  %v920_v20 = vshrl.u32 %v7462_v9, 16 }
  0x2e   : > { %6791 = vmatpush3.bf16.msra.mxu0 %v7403_v29  ;;  %6620 = vmatprep.subr.bf16.mxu1 %v7408_v33  ;;  %v2707_v29 = vsel %vm2636_vm0, %v2697_v14, %v2706_v23  ;;  %v922_v14 = vshll.u32 %v7462_v9, 16  ;;  %v7456_v18 = vld [vmem:[%s7851_s12 + $0x80] sm:$0xff]   ;;  %v3322_v21 = vsel %vm3305_vm1, %v3319_v3, %v3321_v12  ;;  %v7481_v9 = vld [vmem:[%s7851_s12 + $0x38] sm:$0xff]  }
  0x2f   : > { %6828 = vmatprep.subr.bf16.mxu0 %v7410_v39  ;;  %v7920_v31 = vor.u32 %v2714_v27, %v2711_v26  ;;  %v7474_v26 = vld [vmem:[%s8689_s1 + $0x1a8] sm:$0xff]   ;;  %v7465_v27 = vld [vmem:[%s7851_s12 + $0x10] sm:$0xff]  }
  0x30   : > { %6585 = vmatmul.mubr.bf16.vlgmr.msra.gmra.mrb[0].mxu1 %v7407_v37  ;;  %v7432_v37 = vld [vmem:[%s8689_s1 + $0x178] sm:$0xff]  }
  0x31   : > { %6793 = vmatmul.mubr.bf16.vlgmr.msra.gmra.mrb[0].mxu0 %v2662_v47  ;;  %6621 = vmatpush3.bf16.msra.mxu1 %v7408_v33  ;;  %v3307_v33 = vrot.slane %v7435_v28, 2  ;;  %v3311_v47 = vrot.slane %v7440_v42, 2  ;;  %v939_v42 = vshrl.u32 %v7465_v27, 16 }
  0x32   : > { %6829 = vmatpush3.bf16.msra.mxu0 %v7410_v39  ;;  %6588 = vmatprep.mubr.bf16.mxu1 %v7412_v48  ;;  %v2716_v39 = vsel %vm2636_vm0, %v2706_v23, %v7920_v31  ;;  %v7443_v48 = vld [vmem:[%s8689_s1 + $0x180] sm:$0xff]  }
  0x33   : > { %6830 = vmatprep.subr.bf16.mxu0 %v7411_v43  ;;  %6796 = vmatprep.mubr.bf16.mxu0 %v2671_v55  ;;  %v3308_v41 = vsel %vm3305_vm1, %v3306_v34, %v3307_v33  ;;  %v3310_v51 = vsel %vm3305_vm1, %v3307_v33, %v3309_v45  ;;  %v3312_v53 = vsel %vm3305_vm1, %v3309_v45, %v3311_v47  ;;  %v7441_v55 = vld [vmem:[%s7851_s12 + $0x58] sm:$0xff]   ;;  %v7459_v34 = vld [vmem:[%s7851_s12 + $0x88] sm:$0xff]   ;;  %v7480_v45 = vld [vmem:[%s8689_s1 + $0x1b0] sm:$0xff]  }
  0x34   : > { %6622 = vmatprep.subr.bf16.mxu1 %v7417_v52  ;;  %v7469_v33 = vld [vmem:[%s7851_s12 + $0x18] sm:$0xff]  }
  0x35   : > { %6623 = vmatpush3.bf16.msra.mxu1 %v7417_v52  ;;  %v7449_v52 = vld [vmem:[%s8689_s1 + $0x188] sm:$0xff]  }
  0x36   : > { %6831 = vmatpush3.bf16.msra.mxu0 %v7411_v43  ;;  %6624 = vmatprep.subr.bf16.mxu1 %v7424_v1  ;;  %v7444_v43 = vld [vmem:[%s8689_s1 + $0x68] sm:$0xff]  }
  0x37   : > { %6832 = vmatprep.subr.bf16.mxu0 %v7416_v58 }
  0x38   : > { %6589 = vmatmul.mubr.bf16.gmra.mrb[4].mxu1 %v7414_v56  ;;  %v3313_v56 = vrot.slane %v7442_v49, 2  ;;  %v7475_v49 = vld [vmem:[%s7851_s12 + $0x28] sm:$0xff]  }
  0x39   : > { %6797 = vmatmul.mubr.bf16.gmra.mrb[4].mxu0 %v2680_v4  ;;  %6592 = vmatprep.mubr.bf16.mxu1 %v7419_v2  ;;  %v7461_v2 = vld [vmem:[%s8689_s1 + $0x198] sm:$0xff]   ;;  %v7447_v4 = vld [vmem:[%s7851_s12 + $0x68] sm:$0xff]  }
  0x3a   : > { %6833 = vmatpush3.bf16.msra.mxu0 %v7416_v58  ;;  %6800 = vmatprep.mubr.bf16.mxu0 %v2689_v10  ;;  %v3315_v58 = vrot.slane %v7446_v50, 2  ;;  %v3314_v61 = vsel %vm3305_vm1, %v3311_v47, %v3313_v56 }
  0x3b   : > { %6834 = vmatprep.subr.bf16.mxu0 %v7418_v5  ;;  %6625 = vmatpush3.bf16.msra.mxu1 %v7424_v1  ;;  %v3317_v1 = vrot.slane %v7448_v60, 2  ;;  %v959_v60 = vshll.u32 %v7475_v49, 16 }
  0x3c   : > { %6626 = vmatprep.subr.bf16.mxu1 %v7431_v19  ;;  %v3316_v63 = vsel %vm3305_vm1, %v3313_v56, %v3315_v58  ;;  %v7472_v56 = vld [vmem:[%s7851_s12 + $0x78] sm:$0xff]  }
  0x3d   : > { %v3318_v7 = vsel %vm3305_vm1, %v3315_v58, %v3317_v1  ;;  %v3320_v10 = vsel %vm3305_vm1, %v3317_v1, %v3319_v3  ;;  %v7486_v58 = vld [vmem:[%s8689_s1 + $0x1b8] sm:$0xff]   ;;  %v961_v6 = vrot.slane %v959_v60, 1 }
  0x3e   : > { %6835 = vmatpush3.bf16.msra.mxu0 %v7418_v5  ;;  %v7451_v5 = vld [vmem:[%s7851_s12 + $0x70] sm:$0xff]  }
  0x3f   : > { %6836 = vmatprep.subr.bf16.mxu0 %v7423_v16  ;;  %6627 = vmatpush3.bf16.msra.mxu1 %v7431_v19  ;;  %v7460_v19 = vld [vmem:[%s7851_s12 + $0x58] sm:$0xff]  }
  0x40   : > { %6593 = vmatmul.mubr.bf16.gmra.mrb[8].mxu1 %v7421_v13  ;;  %6628 = vmatprep.subr.bf16.mxu1 %v7438_v35  ;;  %v7463_v13 = vld [vmem:[%s7851_s12 + $0x8] sm:$0xff]   ;;  %v3325_v28 = vrot.slane %v7460_v19, 2  ;;  %v7483_v19 = vld [vmem:[%s7851_s12 + $0x40] sm:$0xff]  }
  0x41   : > { %6801 = vmatmul.mubr.bf16.gmra.mrb[8].mxu0 %v2698_v24  ;;  %6596 = vmatprep.mubr.bf16.mxu1 %v7426_v22  ;;  %v924_v22 = vrot.slane %v922_v14, 1  ;;  %v927_v23 = vshll.u32 %v7463_v13, 16 }
  0x42   : > { %6837 = vmatpush3.bf16.msra.mxu0 %v7423_v16  ;;  %6804 = vmatprep.mubr.bf16.mxu0 %v2707_v29  ;;  %v3323_v16 = vrot.slane %v7458_v8, 2  ;;  %v7479_v8 = vld [vmem:[%s8689_s1 + $0x90] sm:$0xff]  }
  0x43   : > { %6838 = vmatprep.subr.bf16.mxu0 %v7425_v25  ;;  %6629 = vmatpush3.bf16.msra.mxu1 %v7438_v35  ;;  %v925_v29 = vor.u32 %v924_v22, %v920_v20  ;;  %v929_v30 = vrot.slane %v927_v23, 1  ;;  %v931_v35 = vshrl.u32 %v7463_v13, 16  ;;  %v7478_v13 = vld [vmem:[%s7851_s12 + $0x88] sm:$0xff]  }
  0x44   : > { %6630 = vmatprep.subr.bf16.mxu1 %v7444_v43  ;;  %v3324_v24 = vsel %vm3305_vm1, %v3321_v12, %v3323_v16  ;;  %v8039_v23 = vld [vmem:[%s7851_s12 + $0x48] sm:$0xff]  }
  0x45   : > { %v930_v40 = vsel %vm918_vm2, %v925_v29, %v929_v30 }
  0x46   : > { %6839 = vmatpush3.bf16.msra.mxu0 %v7425_v25  ;;  %v7464_v25 = vld [vmem:[%s7851_s12 + $0x60] sm:$0xff]  }
  0x47   : > { %6840 = vmatprep.subr.bf16.mxu0 %v7430_v32  ;;  %6631 = vmatpush3.bf16.msra.mxu1 %v7444_v43  ;;  %v943_v43 = vshll.u32 %v7469_v33, 16 }
  0x48   : > { %6597 = vmatmul.mubr.bf16.gmra.mrb[12].mxu1 %v7428_v36  ;;  %6632 = vmatprep.subr.bf16.mxu1 %v7450_v54  ;;  %v935_v36 = vshll.u32 %v7465_v27, 16 }
  0x49   : > { %6805 = vmatmul.mubr.bf16.gmra.mrb[12].mxu0 %v2716_v39  ;;  %6600 = vmatprep.mubr.bf16.mxu1 %v7433_v38  ;;  %v7470_v38 = vld [vmem:[%s7851_s12 + $0x70] sm:$0xff]   ;;  %v3326_v39 = vsel %vm3305_vm1, %v3323_v16, %v3325_v28 }
  0x4a   : > { %6841 = vmatpush3.bf16.msra.mxu0 %v7430_v32  ;;  %6844 = vmatprep.mubr.bf16.mxu0 %v3308_v41  ;;  %v3327_v32 = vrot.slane %v7464_v25, 2  ;;  %v937_v47 = vrot.slane %v935_v36, 1 }
  0x4b   : > { %6842 = vmatprep.subr.bf16.mxu0 %v7432_v37  ;;  %6633 = vmatpush3.bf16.msra.mxu1 %v7450_v54 }
  0x4c   : > { %6634 = vmatprep.subr.bf16.mxu1 %v7457_v62  ;;  %v3328_v41 = vsel %vm3305_vm1, %v3325_v28, %v3327_v32  ;;  %v941_v50 = vor.u32 %v939_v42, %v937_v47 }
  0x4e   : > { %6843 = vmatpush3.bf16.msra.mxu0 %v7432_v37  ;;  %v7467_v37 = vld [vmem:[%s7851_s12 + $0x68] sm:$0xff]  }
  0x4f   : > { %6880 = vmatprep.subr.bf16.mxu0 %v7443_v48  ;;  %6635 = vmatpush3.bf16.msra.mxu1 %v7457_v62 }
  0x50   : > { %6601 = vmatmul.mubr.bf16.gmra.mrb[16].mxu1 %v7436_v44  ;;  %6672 = vmatprep.subr.bf16.mxu1 %v7981_v11  ;;  %v7471_v44 = vld [vmem:[%s7851_s12 + $0x20] sm:$0xff]  }
  0x51   : > { %6845 = vmatmul.mubr.bf16.vlgmr.msra.gmra.mrb[0].mxu0 %v3310_v51  ;;  %6604 = vmatprep.mubr.bf16.mxu1 %v7439_v46  ;;  %v933_v46 = vor.u32 %v931_v35, %v929_v30  ;;  %v945_v51 = vrot.slane %v943_v43, 1  ;;  %v979_v30 = vshrl.u32 %v7481_v9, 16  ;;  %v987_v35 = vshrl.u32 %v7483_v19, 16  ;;  %v7498_v43 = vld [vmem:[%s8689_s1 + $0xa8] sm:$0xff]  }
  0x52   : > { %6848 = vmatprep.mubr.bf16.mxu0 %v3312_v53  ;;  %6881 = vmatpush3.bf16.msra.mxu0 %v7443_v48  ;;  %v3329_v48 = vrot.slane %v7467_v37, 2  ;;  %v951_v53 = vshll.u32 %v7471_v44, 16  ;;  %v991_v37 = vshll.u32 %v8039_v23, 16 }
  0x53   : > { %6882 = vmatprep.subr.bf16.mxu0 %v7449_v52  ;;  %v938_v54 = vsel %vm918_vm2, %v933_v46, %v937_v47  ;;  %v946_v62 = vsel %vm918_vm2, %v941_v50, %v945_v51 }
  0x54   : > { %v953_v1 = vrot.slane %v951_v53, 1  ;;  %v7504_v53 = vld [vmem:[%s8689_s1 + $0xb0] sm:$0xff]  }
  0x56   : > { %6883 = vmatpush3.bf16.msra.mxu0 %v7449_v52  ;;  %v3331_v52 = vrot.slane %v7470_v38, 2  ;;  %v7489_v38 = vld [vmem:[%s7851_s12 + $0x18] sm:$0xff]  }
  0x57   : > { %6884 = vmatprep.subr.bf16.mxu0 %v7455_v59  ;;  %v3842_v50 = vrot.slane %v7489_v38, 2 }
  0x58   : > { %6605 = vmatmul.mubr.bf16.gmra.mrb[20].mxu1 %v7441_v55  ;;  %v947_v55 = vshrl.u32 %v7469_v33, 16  ;;  %v7492_v33 = vld [vmem:[%s8689_s1 + $0xa0] sm:$0xff]  }
  0x59   : > { %6849 = vmatmul.mubr.bf16.gmra.mrb[4].mxu0 %v3314_v61  ;;  %6608 = vmatprep.mubr.bf16.mxu1 %v7445_v57  ;;  %v955_v57 = vshrl.u32 %v7471_v44, 16  ;;  %v7476_v61 = vld [vmem:[%s7851_s12 + $0x80] sm:$0xff]  }
  0x5a   : > { %6852 = vmatprep.mubr.bf16.mxu0 %v3316_v63  ;;  %6885 = vmatpush3.bf16.msra.mxu0 %v7455_v59  ;;  %v3330_v59 = vsel %vm3305_vm1, %v3327_v32, %v3329_v48  ;;  %v3332_v63 = vsel %vm3305_vm1, %v3329_v48, %v3331_v52  ;;  %v949_v3 = vor.u32 %v947_v55, %v945_v51  ;;  %v7484_v32 = vld [vmem:[%s7851_s12 + $0x98] ss:$0 sps:$4 sm:$0x33]   ;;  %v993_v48 = vrot.slane %v991_v37, 1 }
  0x5b   : > { %6886 = vmatprep.subr.bf16.mxu0 %v7461_v2  ;;  %v3341_v47 = vrot.slane %v7484_v32, 2  ;;  %v7493_v51 = vld [vmem:[%s7851_s12 + $0x58] sm:$0xff]  }
  0x5e   : > { %6887 = vmatpush3.bf16.msra.mxu0 %v7461_v2  ;;  %v7477_v2 = vld [vmem:[%s7851_s12 + $0x30] sm:$0xff]  }
  0x5f   : > { %6888 = vmatprep.subr.bf16.mxu0 %v7468_v15  ;;  %v967_v12 = vshll.u32 %v7477_v2, 16  ;;  %v971_v14 = vshrl.u32 %v7477_v2, 16 }
  0x60   : > { %6609 = vmatmul.mubr.bf16.gmra.mrb[24].mxu1 %v7447_v4  ;;  %v3333_v4 = vrot.slane %v7472_v56, 2  ;;  %v995_v56 = vshrl.u32 %v8039_v23, 16  ;;  %v8091_v23 = vld [vmem:[%s8689_s1 + $0xc0] sm:$0xff]  }
  0x61   : > { %6853 = vmatmul.mubr.bf16.gmra.mrb[8].mxu0 %v3318_v7  ;;  %6612 = vmatprep.mubr.bf16.mxu1 %v7451_v5  ;;  %v957_v5 = vor.u32 %v955_v57, %v953_v1  ;;  %v3335_v7 = vrot.slane %v7476_v61, 2  ;;  %v969_v22 = vrot.slane %v967_v12, 1  ;;  %v7491_v57 = vld [vmem:[%s7851_s12 + $0x20] sm:$0xff]   ;;  %v1007_v61 = vshll.u32 %v7493_v51, 16 }
  0x62   : > { %6856 = vmatprep.mubr.bf16.mxu0 %v3320_v10  ;;  %6889 = vmatpush3.bf16.msra.mxu0 %v7468_v15  ;;  %v963_v10 = vshrl.u32 %v7475_v49, 16  ;;  %v7482_v15 = vld [vmem:[%s7851_s12 + $0x90] sm:$0xff]   ;;  %v3334_v16 = vsel %vm3305_vm1, %v3331_v52, %v3333_v4 }
  0x63   : > { %6890 = vmatprep.subr.bf16.mxu0 %v7474_v26  ;;  %v3336_v20 = vsel %vm3305_vm1, %v3333_v4, %v3335_v7  ;;  %v973_v27 = vor.u32 %v971_v14, %v969_v22  ;;  %v3339_v29 = vrot.slane %v7482_v15, 2  ;;  %v7499_v4 = vld [vmem:[%s7851_s12 + $0x68] sm:$0xff]  }
  0x64   : > { %v965_v25 = vor.u32 %v963_v10, %v961_v6  ;;  %v7496_v10 = vld [vmem:[%s7851_s12 + $0x30] sm:$0xff]   ;;  %v1027_v32 = vshrl.u32 %v7499_v4, 16 }
  0x66   : > { %6891 = vmatpush3.bf16.msra.mxu0 %v7474_v26  ;;  %v3337_v26 = vrot.slane %v7478_v13, 2  ;;  %v970_v36 = vsel %vm918_vm2, %v965_v25, %v969_v22  ;;  %v1011_v13 = vshrl.u32 %v7493_v51, 16  ;;  %v3848_v22 = vrot.slane %v7496_v10, 2 }
  0x67   : > { %6892 = vmatprep.subr.bf16.mxu0 %v7480_v45 }
  0x68   : > { %6613 = vmatmul.mubr.bf16.gmra.mrb[28].mxu1 %v7453_v17  ;;  %v962_v17 = vsel %vm918_vm2, %v957_v5, %v961_v6  ;;  %v3340_v42 = vsel %vm3305_vm1, %v3337_v26, %v3339_v29  ;;  %v3844_v5 = vrot.slane %v7491_v57, 2 }
  0x69   : > { %6857 = vmatmul.mubr.bf16.gmra.mrb[12].mxu0 %v3322_v21  ;;  %6616 = vmatprep.mubr.bf16.mxu1 %v7456_v18  ;;  %v975_v18 = vshll.u32 %v7481_v9, 16  ;;  %v7485_v21 = vld [vmem:[%s8689_s1 + $0x98] sm:$0xff]  }
  0x6a   : > { %6860 = vmatprep.mubr.bf16.mxu0 %v3324_v24  ;;  %6893 = vmatpush3.bf16.msra.mxu0 %v7480_v45  ;;  %v8044_v24 = vld [vmem:[%s8689_s1 + $0x1c0] sm:$0xff]   ;;  %v7490_v45 = vld [vmem:[%s7851_s12 + $0x50] sm:$0xff]   ;;  %v3845_v14 = vsel %vm3305_vm1, %v3842_v50, %v3844_v5 }
  0x6b   : > { %6894 = vmatprep.subr.bf16.mxu0 %v7486_v58  ;;  %v977_v28 = vrot.slane %v975_v18, 1  ;;  %v1003_v60 = vshrl.u32 %v7490_v45, 16 }
  0x6d   : > { %v981_v46 = vor.u32 %v979_v30, %v977_v28  ;;  %v7509_v30 = vld [vmem:[%s8689_s1 + $0x1d0] sm:$0xff]  }
  0x6e   : > { %6895 = vmatpush3.bf16.msra.mxu0 %v7486_v58  ;;  %v3342_v58 = vsel %vm3305_vm1, %v3339_v29, %v3341_v47 }
  0x6f   : > { %6932 = vmatprep.subr.bf16.mxu0 %v8044_v24 }
  0x70   : > { %6617 = vmatmul.mubr.bf16.gmra.mrb[32].mxu1 %v7459_v34  ;;  %v983_v34 = vshll.u32 %v7483_v19, 16 }
  0x71   : > { %6861 = vmatmul.mubr.bf16.gmra.mrb[16].mxu0 %v3326_v39  ;;  %6636 = vmatprep.mubr.bf16.mxu1 %v930_v40  ;;  %v3338_v39 = vsel %vm3305_vm1, %v3335_v7, %v3337_v26  ;;  %v978_v40 = vsel %vm918_vm2, %v973_v27, %v977_v28  ;;  %v1009_v7 = vrot.slane %v1007_v61, 1  ;;  %v7505_v27 = vld [vmem:[%s7851_s12 + $0x78] sm:$0xff]   ;;  %v7513_v61 = vld [vmem:[%s7851_s12 + $0x90] ss:$0 sps:$4 sm:$0x11]  }
  0x72   : > { %6864 = vmatprep.mubr.bf16.mxu0 %v3328_v41  ;;  %v7488_v41 = vld [vmem:[%s7851_s12 + $0x10] sm:$0xfc]   ;;  %v985_v44 = vrot.slane %v983_v34, 1  ;;  %v1039_v38 = vshll.u32 %v7505_v27, 16  ;;  %v1043_v51 = vshrl.u32 %v7505_v27, 16  ;;  %v1063_v10 = vshll.u32 %v7513_v61, 16 }
  0x73   : > { %v3841_v52 = vrot.slane %v7488_v41, 2  ;;  %v1013_v25 = vor.u32 %v1011_v13, %v1009_v7  ;;  %v7515_v41 = vld [vmem:[%s8689_s1 + $0x1d8] sm:$0xff]   ;;  %v7521_v27 = vld [vmem:[%s7851_s12 + $0x70] sm:$0xff]  }
  0x74   : > { %v989_v49 = vor.u32 %v987_v35, %v985_v44  ;;  %v986_v55 = vsel %vm918_vm2, %v981_v46, %v985_v44  ;;  %v7502_v35 = vld [vmem:[%s7851_s12 + $0x40] sm:$0xff]   ;;  %v1041_v47 = vrot.slane %v1039_v38, 1  ;;  %v7539_v61 = vld [vmem:[%s8689_s1 + $0xd8] sm:$0xff]  }
  0x75   : > { %v7525_v38 = vld [vmem:[%s7851_s12 + $0x20] sm:$0xff]  }
  0x78   : > { %6637 = vmatmul.mubr.bf16.vlgmr.msra.gmra.mrb[0].mxu1 %v938_v54  ;;  %v999_v54 = vshll.u32 %v7490_v45, 16  ;;  %v3852_v45 = vrot.slane %v7502_v35, 2  ;;  %v3864_v35 = vrot.slane %v7521_v27, 2 }
  0x79   : > { %6865 = vmatmul.mubr.bf16.gmra.mrb[20].mxu0 %v3330_v59  ;;  %6673 = vmatpush3.bf16.msra.mxu1 %v7981_v11  ;;  %v954_v11 = vsel %vm918_vm2, %v949_v3, %v953_v1  ;;  %v994_v59 = vsel %vm918_vm2, %v989_v49, %v993_v48  ;;  %v7511_v1 = vld [vmem:[%s8689_s1 + $0xb8] sm:$0xff]   ;;  %v997_v3 = vor.u32 %v995_v56, %v993_v48  ;;  %v7510_v48 = vld [vmem:[%s7851_s12 + $0x88] sm:$0xff]  }
  0x7a   : > { %6640 = vmatprep.mubr.bf16.mxu1 %v946_v62  ;;  %6868 = vmatprep.mubr.bf16.mxu0 %v3332_v63  ;;  %v7494_v62 = vld [vmem:[%s7851_s12 + $0x28] sm:$0xff]   ;;  %v7495_v63 = vld [vmem:[%s7851_s12 + $0x60] sm:$0xff]   ;;  %v1001_v2 = vrot.slane %v999_v54, 1  ;;  %v7508_v54 = vld [vmem:[%s7851_s12 + $0x50] sm:$0xff]  }
  0x7b   : > { %6674 = vmatprep.subr.bf16.mxu1 %v7473_v0  ;;  %v1015_v9 = vshll.u32 %v7495_v63, 16 }
  0x7c   : > { %v1005_v6 = vor.u32 %v1003_v60, %v1001_v2  ;;  %v1002_v12 = vsel %vm918_vm2, %v997_v3, %v1001_v2 }
  0x7d   : > { %6675 = vmatpush3.bf16.msra.mxu1 %v7473_v0  ;;  %v3843_v0 = vsel %vm3305_vm1, %v3841_v52, %v3842_v50  ;;  %v1017_v19 = vrot.slane %v1015_v9, 1  ;;  %v7522_v50 = vld [vmem:[%s8689_s1 + $0x1e0] sm:$0xff]  }
  0x7e   : > { %6676 = vmatprep.subr.bf16.mxu1 %v7479_v8  ;;  %v1010_v15 = vsel %vm918_vm2, %v1005_v6, %v1009_v7  ;;  %v1059_v6 = vshrl.u32 %v7510_v48, 16  ;;  %v7514_v7 = vld [vmem:[%s7851_s12 + $0x60] sm:$0xff]  }
  0x7f   : > { %v1018_v34 = vsel %vm918_vm2, %v1013_v25, %v1017_v19 }
  0x80   : > { %6641 = vmatmul.mubr.bf16.gmra.mrb[4].mxu1 %v954_v11  ;;  %v1023_v11 = vshll.u32 %v7499_v4, 16 }
  0x81   : > { %6869 = vmatmul.mubr.bf16.gmra.mrb[24].mxu0 %v3334_v16  ;;  %6644 = vmatprep.mubr.bf16.mxu1 %v962_v17  ;;  %v1019_v16 = vshrl.u32 %v7495_v63, 16  ;;  %v7500_v17 = vld [vmem:[%s7851_s12 + $0x38] sm:$0xff]  }
  0x82   : > { %6872 = vmatprep.mubr.bf16.mxu0 %v3336_v20  ;;  %6677 = vmatpush3.bf16.msra.mxu1 %v7479_v8  ;;  %v3846_v8 = vrot.slane %v7494_v62, 2  ;;  %v7501_v20 = vld [vmem:[%s7851_s12 + $0x70] sm:$0xff]   ;;  %v1025_v26 = vrot.slane %v1023_v11, 1  ;;  %v3850_v29 = vrot.slane %v7500_v17, 2  ;;  %v7528_v62 = vld [vmem:[%s8689_s1 + $0x1e8] sm:$0xff]  }
  0x83   : > { %6678 = vmatprep.subr.bf16.mxu1 %v7485_v21  ;;  %v1021_v28 = vor.u32 %v1019_v16, %v1017_v19  ;;  %v7540_v16 = vld [vmem:[%s8689_s1 + $0x1f8] sm:$0xff]   ;;  %v3860_v19 = vrot.slane %v7514_v7, 2  ;;  %v7546_v7 = vld [vmem:[%s8689_s1 + $0xe0] sm:$0xff]  }
  0x84   : > { %v3847_v18 = vsel %vm3305_vm1, %v3844_v5, %v3846_v8  ;;  %v3849_v37 = vsel %vm3305_vm1, %v3846_v8, %v3848_v22  ;;  %v1029_v44 = vor.u32 %v1027_v32, %v1025_v26  ;;  %v3853_v56 = vsel %vm3305_vm1, %v3850_v29, %v3852_v45  ;;  %v7534_v5 = vld [vmem:[%s8689_s1 + $0x1f0] sm:$0xff]   ;;  %v7517_v8 = vld [vmem:[%s7851_s12 + $0x8] sm:$0xff]  }
  0x86   : > { %6679 = vmatpush3.bf16.msra.mxu1 %v7485_v21  ;;  %v7503_v21 = vld [vmem:[%s8689_s1 + $0x1c8] sm:$0xff]  }
  0x87   : > { %6680 = vmatprep.subr.bf16.mxu1 %v7492_v33 }
  0x88   : > { %6645 = vmatmul.mubr.bf16.gmra.mrb[8].mxu1 %v970_v36  ;;  %v1035_v36 = vshrl.u32 %v7501_v20, 16 }
  0x89   : > { %6873 = vmatmul.mubr.bf16.gmra.mrb[28].mxu0 %v3338_v39  ;;  %6648 = vmatprep.mubr.bf16.mxu1 %v978_v40  ;;  %v7506_v39 = vld [vmem:[%s7851_s12 + $0x48] sm:$0xff]   ;;  %v3851_v40 = vsel %vm3305_vm1, %v3848_v22, %v3850_v29 }
  0x8a   : > { %6876 = vmatprep.mubr.bf16.mxu0 %v3340_v42  ;;  %6681 = vmatpush3.bf16.msra.mxu1 %v7492_v33  ;;  %v1031_v33 = vshll.u32 %v7501_v20, 16  ;;  %v3854_v49 = vrot.slane %v7506_v39, 2 }
  0x8b   : > { %6682 = vmatprep.subr.bf16.mxu1 %v7498_v43 }
  0x8c   : > { %v1033_v42 = vrot.slane %v1031_v33, 1  ;;  %v3855_v60 = vsel %vm3305_vm1, %v3852_v45, %v3854_v49  ;;  %v7524_v33 = vld [vmem:[%s7851_s12 + $0x78] sm:$0xff]  }
  0x8e   : > { %6683 = vmatpush3.bf16.msra.mxu1 %v7498_v43  ;;  %v7507_v43 = vld [vmem:[%s7851_s12 + $0x80] sm:$0xff]   ;;  %v1037_v46 = vor.u32 %v1035_v36, %v1033_v42 }
  0x8f   : > { %6684 = vmatprep.subr.bf16.mxu1 %v7504_v53  ;;  %v1047_v52 = vshll.u32 %v7507_v43, 16 }
  0x90   : > { %6649 = vmatmul.mubr.bf16.gmra.mrb[12].mxu1 %v986_v55  ;;  %v1051_v55 = vshrl.u32 %v7507_v43, 16  ;;  %v1042_v57 = vsel %vm918_vm2, %v1037_v46, %v1041_v47  ;;  %v7529_v43 = vld [vmem:[%s7851_s12 + $0x28] sm:$0xff]  }
  0x91   : > { %6877 = vmatmul.mubr.bf16.gmra.mrb[32].mxu0 %v3342_v58  ;;  %6652 = vmatprep.mubr.bf16.mxu1 %v994_v59  ;;  %v1055_v58 = vshll.u32 %v7510_v48, 16  ;;  %v7512_v59 = vld [vmem:[%s7851_s12 + $0x58] sm:$0xff]   ;;  %v1049_v63 = vrot.slane %v1047_v52, 1  ;;  %v7530_v46 = vld [vmem:[%s7851_s12 + $0x88] sm:$0xff]  }
  0x92   : > { %6896 = vmatprep.mubr.bf16.mxu0 %v3843_v0  ;;  %6685 = vmatpush3.bf16.msra.mxu1 %v7504_v53  ;;  %v1034_v53 = vsel %vm918_vm2, %v1029_v44, %v1033_v42  ;;  %v1045_v0 = vor.u32 %v1043_v51, %v1041_v47  ;;  %v3858_v4 = vrot.slane %v7512_v59, 2  ;;  %v7527_v42 = vld [vmem:[%s8689_s1 + $0xc8] sm:$0xff]   ;;  %v1573_v47 = vrot.slane %v7525_v38, 1  ;;  %v7533_v51 = vld [vmem:[%s8689_s1 + $0xd0] sm:$0xff]   ;;  %v7543_v59 = vld [vmem:[%s7851_s12 + $0x18] sm:$0xff]  }
  0x93   : > { %6686 = vmatprep.subr.bf16.mxu1 %v7511_v1  ;;  %v1053_v2 = vor.u32 %v1051_v55, %v1049_v63  ;;  %v1057_v3 = vrot.slane %v1055_v58, 1  ;;  %v3870_v52 = vrot.slane %v7530_v46, 2  ;;  %v8172_v55 = vld [vmem:[%s7851_s12 + $0x98] sm:$0xff]  }
  0x94   : > { %v1050_v9 = vsel %vm918_vm2, %v1045_v0, %v1049_v63 }
  0x95   : > { %v1058_v11 = vsel %vm918_vm2, %v1053_v2, %v1057_v3  ;;  %v1061_v17 = vor.u32 %v1059_v6, %v1057_v3  ;;  %v3874_v2 = vrot.slane %v8172_v55, 2  ;;  %v4389_v6 = vshll.u32 %v7543_v59, 16 }
  0x96   : > { %6687 = vmatpush3.bf16.msra.mxu1 %v7511_v1  ;;  %v3856_v1 = vrot.slane %v7508_v54, 2  ;;  %v8169_v54 = vld [vmem:[%s7851_s12 + $0x38] sm:$0xff]  }
  0x97   : > { %6724 = vmatprep.subr.bf16.mxu1 %v8091_v23 }
  0x98   : > { %6653 = vmatmul.mubr.bf16.gmra.mrb[16].mxu1 %v1002_v12  ;;  %v7518_v12 = vld [vmem:[%s7851_s12 + $0x68] sm:$0xff]   ;;  %v3857_v13 = vsel %vm3305_vm1, %v3854_v49, %v3856_v1  ;;  %v1575_v49 = vrot.slane %v7529_v43, 1 }
  0x99   : > { %6897 = vmatmul.mubr.bf16.vlgmr.msra.gmra.mrb[0].mxu0 %v3845_v14  ;;  %6656 = vmatprep.mubr.bf16.mxu1 %v1010_v15  ;;  %v7516_v14 = vld [vmem:[%s7851_s12] sm:$0xfe]   ;;  %v3859_v15 = vsel %vm3305_vm1, %v3856_v1, %v3858_v4  ;;  %v3862_v22 = vrot.slane %v7518_v12, 2  ;;  %v1579_v1 = vrot.slane %v8169_v54, 1  ;;  %v7541_v12 = vld [vmem:[%s7851_s12 + $0x48] sm:$0xff]  }
  0x9a   : > { %6900 = vmatprep.mubr.bf16.mxu0 %v3847_v18  ;;  %6933 = vmatpush3.bf16.msra.mxu0 %v8044_v24  ;;  %v1026_v24 = vsel %vm918_vm2, %v1021_v28, %v1025_v26  ;;  %v1065_v18 = vrot.slane %v1063_v10, 1  ;;  %v1566_v20 = vrot.slane %v7516_v14, 1  ;;  %v7519_v26 = vld [vmem:[%s7851_s12 + $0x10] sm:$0xff]   ;;  %v3861_v28 = vsel %vm3305_vm1, %v3858_v4, %v3860_v19 }
  0x9b   : > { %6934 = vmatprep.subr.bf16.mxu0 %v7503_v21  ;;  %v3863_v32 = vsel %vm3305_vm1, %v3860_v19, %v3862_v22  ;;  %v1576_v58 = vsel %vm1565_vm3, %v1573_v47, %v1575_v49  ;;  %v1583_v27 = vrot.slane %v7541_v12, 1 }
  0x9c   : > { %v1066_v25 = vsel %vm918_vm2, %v1061_v17, %v1065_v18 }
  0x9e   : > { %6935 = vmatpush3.bf16.msra.mxu0 %v7503_v21  ;;  %v1567_v21 = vrot.slane %v7517_v8, 1  ;;  %v7537_v8 = vld [vmem:[%s7851_s12 + $0x40] sm:$0xff]  }
  0x9f   : > { %6936 = vmatprep.subr.bf16.mxu0 %v7509_v30 }
  0xa0   : > { %6657 = vmatmul.mubr.bf16.gmra.mrb[20].mxu1 %v1018_v34  ;;  %v1568_v29 = vsel %vm1565_vm3, %v1566_v20, %v1567_v21  ;;  %v1569_v34 = vrot.slane %v7519_v26, 1  ;;  %v4391_v20 = vrot.slane %v4389_v6, 3 }
  0xa1   : > { %6901 = vmatmul.mubr.bf16.gmra.mrb[4].mxu0 %v3849_v37  ;;  %6660 = vmatprep.mubr.bf16.mxu1 %v1026_v24  ;;  %v3866_v37 = vrot.slane %v7524_v33, 2  ;;  %v8148_v24 = vld [vmem:[%s8689_s1 + $0x200] sm:$0xff]  }
  0xa2   : > { %6904 = vmatprep.mubr.bf16.mxu0 %v3851_v40  ;;  %6937 = vmatpush3.bf16.msra.mxu0 %v7509_v30  ;;  %v7523_v30 = vld [vmem:[%s7851_s12 + $0x18] sm:$0xff]   ;;  %v1570_v39 = vsel %vm1565_vm3, %v1567_v21, %v1569_v34  ;;  %v7526_v40 = vld [vmem:[%s7851_s12 + $0x80] sm:$0xff]   ;;  %v7552_v21 = vld [vmem:[%s8689_s1 + $0xe8] sm:$0xff]  }
  0xa3   : > { %6938 = vmatprep.subr.bf16.mxu0 %v7515_v41  ;;  %v1571_v36 = vrot.slane %v7523_v30, 1  ;;  %v3867_v45 = vsel %vm3305_vm1, %v3864_v35, %v3866_v37  ;;  %v3868_v48 = vrot.slane %v7526_v40, 2 }
  0xa5   : > { %v1572_v44 = vsel %vm1565_vm3, %v1569_v34, %v1571_v36  ;;  %v7558_v34 = vld [vmem:[%s8689_s1 + $0xf0] sm:$0xff]  }
  0xa6   : > { %6939 = vmatpush3.bf16.msra.mxu0 %v7515_v41  ;;  %v3865_v41 = vsel %vm3305_vm1, %v3862_v22, %v3864_v35  ;;  %v1581_v22 = vrot.slane %v7537_v8, 1  ;;  %v7544_v35 = vld [vmem:[%s7851_s12 + $0x50] sm:$0xff]  }
  0xa7   : > { %6940 = vmatprep.subr.bf16.mxu0 %v7522_v50 }
  0xa8   : > { %6661 = vmatmul.mubr.bf16.gmra.mrb[24].mxu1 %v1034_v53  ;;  %v7532_v53 = vld [vmem:[%s7851_s12 + $0x90] sm:$0xff]   ;;  %v1584_v40 = vsel %vm1565_vm3, %v1581_v22, %v1583_v27 }
  0xa9   : > { %6905 = vmatmul.mubr.bf16.gmra.mrb[8].mxu0 %v3853_v56  ;;  %6664 = vmatprep.mubr.bf16.mxu1 %v1042_v57  ;;  %v7542_v56 = vld [vmem:[%s7851_s12 + $0x10] sm:$0xfc]   ;;  %v3869_v57 = vsel %vm3305_vm1, %v3866_v37, %v3868_v48  ;;  %v3872_v0 = vrot.slane %v7532_v53, 2  ;;  %v1582_v37 = vsel %vm1565_vm3, %v1579_v1, %v1581_v22 }
  0xaa   : > { %6908 = vmatprep.mubr.bf16.mxu0 %v3855_v60  ;;  %6941 = vmatpush3.bf16.msra.mxu0 %v7522_v50  ;;  %v7531_v50 = vld [vmem:[%s7851_s12 + $0x30] sm:$0xff]   ;;  %v3871_v60 = vsel %vm3305_vm1, %v3868_v48, %v3870_v52  ;;  %v4378_v3 = vshrl.u32 %v7542_v56, 16  ;;  %v4381_v4 = vshll.u32 %v7542_v56, 16  ;;  %v1585_v48 = vrot.slane %v7544_v35, 1 }
  0xab   : > { %6942 = vmatprep.subr.bf16.mxu0 %v7528_v62  ;;  %v1577_v63 = vrot.slane %v7531_v50, 1  ;;  %v3875_v17 = vsel %vm3305_vm1, %v3872_v0, %v3874_v2 }
  0xac   : > { %v4383_v18 = vrot.slane %v4381_v4, 3  ;;  %v1586_v56 = vsel %vm1565_vm3, %v1583_v27, %v1585_v48  ;;  %v8230_v4 = vld [vmem:[%s8689_s1 + $0x100] sm:$0xff]   ;;  %v7569_v27 = vld [vmem:[%s8689_s1 + $0x218] sm:$0xff]  }
  0xad   : > { %v1578_v10 = vsel %vm1565_vm3, %v1575_v49, %v1577_v63  ;;  %v1580_v14 = vsel %vm1565_vm3, %v1577_v63, %v1579_v1  ;;  %v7560_v63 = vld [vmem:[%s7851_s12 + $0x48] sm:$0xff]  }
  0xae   : > { %6943 = vmatpush3.bf16.msra.mxu0 %v7528_v62  ;;  %v7734_v62 = vmov 0   ;;  %v4440_v12 = vshrl.u32 %v7560_v63, 16 }
  0xaf   : > { %6944 = vmatprep.subr.bf16.mxu0 %v7534_v5  ;;  %7386 = vset.pattern.permute.xlu0 %v7734_v62 }
  0xb0   : > { %6665 = vmatmul.mubr.bf16.gmra.mrb[28].mxu1 %v1050_v9  ;;  %7387 = vset.pattern.permute.xlu1 %v7734_v62  ;;  %v7538_v9 = vld [vmem:[%s7851_s12 + $0xa0] ss:$0 sps:$4 sm:$0x33]  }
  0xb1   : > { %6909 = vmatmul.mubr.bf16.gmra.mrb[12].mxu0 %v3857_v13  ;;  %6668 = vmatprep.mubr.bf16.mxu1 %v1058_v11  ;;  %v7545_v13 = vld [vmem:[%s7851_s12 + $0x20] sm:$0xff]   ;;  %v3873_v11 = vsel %vm3305_vm1, %v3870_v52, %v3872_v0  ;;  %v3876_v26 = vrot.slane %v7538_v9, 2  ;;  %v7555_v9 = vld [vmem:[%s7851_s12 + $0x70] sm:$0xff]  }
  0xb2   : > { %6912 = vmatprep.mubr.bf16.mxu0 %v3859_v15  ;;  %6945 = vmatpush3.bf16.msra.mxu0 %v7534_v5  ;;  %v4386_v5 = vshrl.u32 %v7543_v59, 16  ;;  %v4380_v15 = vrot.slane %v4378_v3, 2  ;;  %v7556_v59 = vld [vmem:[%s7851_s12 + $0x40] sm:$0xff]   ;;  %v7557_v3 = vld [vmem:[%s8689_s1 + $0x208] sm:$0xff]  }
  0xb3   : > { %6946 = vmatprep.subr.bf16.mxu0 %v7540_v16 }
  0xb4   : > { %v4388_v19 = vrot.slane %v4386_v5, 2  ;;  %v4384_v30 = vor.u32 %v4383_v18, %v4380_v15  ;;  %v7563_v15 = vld [vmem:[%s8689_s1 + $0x210] sm:$0xff]  }
  0xb6   : > { %6947 = vmatpush3.bf16.msra.mxu0 %v7540_v16  ;;  %v7548_v16 = vld [vmem:[%s7851_s12 + $0x28] sm:$0xff]  }
  0xb7   : > { %6984 = vmatprep.subr.bf16.mxu0 %v8148_v24  ;;  %v4407_v33 = vshll.u32 %v7548_v16, 16 }
  0xb8   : > { %6669 = vmatmul.mubr.bf16.gmra.mrb[32].mxu1 %v1066_v25  ;;  %v4395_v25 = vshrl.u32 %v7545_v13, 16 }
  0xb9   : > { %6913 = vmatmul.mubr.bf16.gmra.mrb[16].mxu0 %v3861_v28  ;;  %6688 = vmatprep.mubr.bf16.mxu1 %v1568_v29  ;;  %v4398_v28 = vshll.u32 %v7545_v13, 16  ;;  %v4404_v29 = vshrl.u32 %v7548_v16, 16  ;;  %v4409_v46 = vrot.slane %v4407_v33, 3  ;;  %v7562_v16 = vld [vmem:[%s7851_s12 + $0x50] sm:$0xff]  }
  0xba   : > { %6916 = vmatprep.mubr.bf16.mxu0 %v3863_v32  ;;  %v4392_v32 = vor.u32 %v4391_v20, %v4388_v19  ;;  %v4397_v38 = vrot.slane %v4395_v25, 2  ;;  %v4442_v25 = vrot.slane %v4440_v12, 2 }
  0xbb   : > { %v4406_v43 = vrot.slane %v4404_v29, 2 }
  0xbd   : > { %v4410_v53 = vor.u32 %v4409_v46, %v4406_v43 }
  0xc0   : > { %6689 = vmatmul.mubr.bf16.vlgmr.msra.gmra.mrb[0].mxu1 %v1570_v39  ;;  %v3877_v39 = vsel %vm3305_vm1, %v3874_v2, %v3876_v26 }
  0xc1   : > { %6917 = vmatmul.mubr.bf16.gmra.mrb[20].mxu0 %v3865_v41  ;;  %6725 = vmatpush3.bf16.msra.mxu1 %v8091_v23  ;;  %v1574_v23 = vsel %vm1565_vm3, %v1571_v36, %v1573_v47  ;;  %v7550_v36 = vld [vmem:[%s7851_s12 + $0x30] sm:$0xff]   ;;  %v4400_v41 = vrot.slane %v4398_v28, 3  ;;  %v7565_v47 = vld [vmem:[%s8689_s1 + $0xf8] sm:$0xff]   ;;  %v1593_v28 = vrot.slane %v7555_v9, 1 }
  0xc2   : > { %6692 = vmatprep.mubr.bf16.mxu1 %v1572_v44  ;;  %6920 = vmatprep.mubr.bf16.mxu0 %v3867_v45  ;;  %v7554_v44 = vld [vmem:[%s7851_s12 + $0x38] sm:$0xff]   ;;  %v4393_v45 = vsel %vm4376_vm4, %v4384_v30, %v4392_v32  ;;  %v4413_v49 = vshrl.u32 %v7550_v36, 16  ;;  %v4416_v52 = vshll.u32 %v7550_v36, 16  ;;  %v4449_v30 = vshrl.u32 %v7562_v16, 16  ;;  %v7561_v36 = vld [vmem:[%s7851_s12 + $0x80] sm:$0xff]  }
  0xc3   : > { %6726 = vmatprep.subr.bf16.mxu1 %v7527_v42  ;;  %v4401_v50 = vor.u32 %v4400_v41, %v4397_v38  ;;  %v4422_v54 = vshrl.u32 %v7554_v44, 16  ;;  %v4425_v55 = vshll.u32 %v7554_v44, 16  ;;  %v7575_v38 = vld [vmem:[%s8689_s1 + $0x220] sm:$0xff]   ;;  %v7590_v9 = vld [vmem:[%s8689_s1 + $0x238] sm:$0xff]  }
  0xc4   : > { %v4418_v62 = vrot.slane %v4416_v52, 3  ;;  %v1597_v52 = vrot.slane %v7561_v36, 1  ;;  %v5437_v36 = vld [vmem:[%s8690_s2 + $0x18] sm:$0xff] }
  0xc5   : > { %6727 = vmatpush3.bf16.msra.mxu1 %v7527_v42  ;;  %v7547_v42 = vld [vmem:[%s7851_s12 + $0x58] sm:$0xff]   ;;  %v4411_v0 = vsel %vm4376_vm4, %v4401_v50, %v4410_v53  ;;  %v4424_v1 = vrot.slane %v4422_v54, 2  ;;  %v4427_v2 = vrot.slane %v4425_v55, 3 }
  0xc6   : > { %6728 = vmatprep.subr.bf16.mxu1 %v7533_v51 }
  0xc7   : > { %v4428_v13 = vor.u32 %v4427_v2, %v4424_v1  ;;  %v7574_v1 = vld [vmem:[%s7851_s12 + $0x70] sm:$0xff]  }
  0xc8   : > { %6693 = vmatmul.mubr.bf16.gmra.mrb[4].mxu1 %v1574_v23  ;;  %v7549_v23 = vld [vmem:[%s7851_s12 + $0x60] sm:$0xff]  }
  0xc9   : > { %6921 = vmatmul.mubr.bf16.gmra.mrb[24].mxu0 %v3869_v57  ;;  %6696 = vmatprep.mubr.bf16.mxu1 %v1576_v58  ;;  %v4415_v57 = vrot.slane %v4413_v49, 2  ;;  %v8217_v58 = vld [vmem:[%s7851_s12 + $0x68] sm:$0xff]   ;;  %v1589_v5 = vrot.slane %v7549_v23, 1 }
  0xca   : > { %6924 = vmatprep.mubr.bf16.mxu0 %v3871_v60  ;;  %6729 = vmatpush3.bf16.msra.mxu1 %v7533_v51  ;;  %v1587_v51 = vrot.slane %v7547_v42, 1  ;;  %v4402_v60 = vsel %vm4376_vm4, %v4392_v32, %v4401_v50  ;;  %v1591_v6 = vrot.slane %v8217_v58, 1  ;;  %v4452_v32 = vshll.u32 %v7562_v16, 16  ;;  %v7580_v50 = vld [vmem:[%s8689_s1 + $0x228] sm:$0xff]   ;;  %v5434_v16 = vld [vmem:[%s8690_s2] sm:$0xff] }
  0xcb   : > { %6730 = vmatprep.subr.bf16.mxu1 %v7539_v61  ;;  %v4419_v8 = vor.u32 %v4418_v62, %v4415_v57  ;;  %v4451_v42 = vrot.slane %v4449_v30, 2  ;;  %v7567_v57 = vld [vmem:[%s7851_s12 + $0x90] ss:$0 sps:$4 sm:$0x11]   ;;  %v7570_v58 = vld [vmem:[%s7851_s12 + $0x8] sm:$0xfe]   ;;  %5472 = vperm.xlu0 %7386, %v5434_v16  }
  0xcc   : > { %v1590_v18 = vsel %vm1565_vm3, %v1587_v51, %v1589_v5  ;;  %v1594_v41 = vsel %vm1565_vm3, %v1591_v6, %v1593_v28  ;;  %v4454_v43 = vrot.slane %v4452_v32, 3  ;;  %v8275_v62 = vld [vmem:[%s7851_s12 + $0x10] sm:$0xff]   ;;  %v2101_v12 = vrot.slane %v7570_v58, 1  ;;  %v7582_v30 = vld [vmem:[%s7851_s12 + $0x88] sm:$0xff]  }
  0xcd   : > { %v4420_v19 = vsel %vm4376_vm4, %v4410_v53, %v4419_v8  ;;  %v4429_v22 = vsel %vm4376_vm4, %v4419_v8, %v4428_v13 }
  0xce   : > { %6731 = vmatpush3.bf16.msra.mxu1 %v7539_v61  ;;  %v1588_v61 = vsel %vm1565_vm3, %v1585_v48, %v1587_v51  ;;  %v4455_v54 = vor.u32 %v4454_v43, %v4451_v42  ;;  %v4512_v43 = vshrl.u32 %v7582_v30, 16 }
  0xcf   : > { %6732 = vmatprep.subr.bf16.mxu1 %v7546_v7 }
  0xd0   : > { %6697 = vmatmul.mubr.bf16.gmra.mrb[8].mxu1 %v1578_v10  ;;  %v4434_v10 = vshll.u32 %v7556_v59, 16 }
  0xd1   : > { %6925 = vmatmul.mubr.bf16.gmra.mrb[28].mxu0 %v3873_v11  ;;  %6700 = vmatprep.mubr.bf16.mxu1 %v1580_v14  ;;  %v8237_v11 = vld [vmem:[%s7851_s12 + $0x78] sm:$0xff]   ;;  %v4443_v14 = vshll.u32 %v7560_v63, 16 }
  0xd2   : > { %6928 = vmatprep.mubr.bf16.mxu0 %v3875_v17  ;;  %6733 = vmatpush3.bf16.msra.mxu1 %v7546_v7  ;;  %v4431_v7 = vshrl.u32 %v7556_v59, 16  ;;  %v7566_v17 = vld [vmem:[%s7851_s12 + $0x58] sm:$0xff]   ;;  %v1595_v29 = vrot.slane %v8237_v11, 1  ;;  %v2102_v11 = vrot.slane %v8275_v62, 1  ;;  %v5443_v62 = vld [vmem:[%s8690_s2 + $0x48] sm:$0xff] }
  0xd3   : > { %6734 = vmatprep.subr.bf16.mxu1 %v7552_v21  ;;  %v4445_v26 = vrot.slane %v4443_v14, 3  ;;  %v4458_v33 = vshrl.u32 %v7566_v17, 16  ;;  %v4485_v14 = vshrl.u32 %v7574_v1, 16 }
  0xd4   : > { %v4433_v20 = vrot.slane %v4431_v7, 2  ;;  %v1598_v63 = vsel %vm1565_vm3, %v1595_v29, %v1597_v52 }
  0xd5   : > { %v4446_v35 = vor.u32 %v4445_v26, %v4442_v25  ;;  %v4460_v46 = vrot.slane %v4458_v33, 2  ;;  %v7579_v25 = vld [vmem:[%s7851_s12 + $0x80] sm:$0xff]  }
  0xd6   : > { %6735 = vmatpush3.bf16.msra.mxu1 %v7552_v21  ;;  %v4436_v21 = vrot.slane %v4434_v10, 3  ;;  %v1601_v10 = vrot.slane %v7567_v57, 1  ;;  %v8304_v33 = vld [vmem:[%s7851_s12 + $0x20] sm:$0xff]   ;;  %v4506_v42 = vshll.u32 %v7579_v25, 16 }
  0xd7   : > { %6736 = vmatprep.subr.bf16.mxu1 %v7558_v34  ;;  %v4456_v2 = vsel %vm4376_vm4, %v4446_v35, %v4455_v54 }
  0xd8   : > { %6701 = vmatmul.mubr.bf16.gmra.mrb[12].mxu1 %v1582_v37  ;;  %v4461_v37 = vshll.u32 %v7566_v17, 16 }
  0xd9   : > { %6929 = vmatmul.mubr.bf16.gmra.mrb[32].mxu0 %v3877_v39  ;;  %6704 = vmatprep.mubr.bf16.mxu1 %v1584_v40  ;;  %v8257_v39 = vld [vmem:[%s7851_s12 + $0x88] sm:$0xff]   ;;  %v7568_v40 = vld [vmem:[%s7851_s12 + $0x60] sm:$0xff]  }
  0xda   : > { %6948 = vmatprep.mubr.bf16.mxu0 %v4393_v45  ;;  %6737 = vmatpush3.bf16.msra.mxu1 %v7558_v34  ;;  %v4437_v34 = vor.u32 %v4436_v21, %v4433_v20  ;;  %v1596_v45 = vsel %vm1565_vm3, %v1593_v28, %v1595_v29  ;;  %v4463_v49 = vrot.slane %v4461_v37, 3  ;;  %v4467_v51 = vshrl.u32 %v7568_v40, 16  ;;  %v5436_v20 = vld [vmem:[%s8690_s2 + $0x10] sm:$0xff]  ;;  %v5435_v21 = vld [vmem:[%s8690_s2 + $0x8] sm:$0xff] }
  0xdb   : > { %6738 = vmatprep.subr.bf16.mxu1 %v7565_v47  ;;  %v4470_v53 = vshll.u32 %v7568_v40, 16  ;;  %v1599_v55 = vrot.slane %v8257_v39, 1  ;;  %5482 = vperm.xlu1 %7387, %v5436_v20   ;;  %v4487_v28 = vrot.slane %v4485_v14, 2  ;;  %v4503_v39 = vshrl.u32 %v7579_v25, 16  ;;  %v5439_v40 = vld [vmem:[%s8690_s2 + $0x28] sm:$0xff]  ;;  %v5446_v20 = vld [vmem:[%s8690_s2 + $0x60] sm:$0xff] }
  0xdc   : > { %v4438_v44 = vsel %vm4376_vm4, %v4428_v13, %v4437_v34  ;;  %v4447_v48 = vsel %vm4376_vm4, %v4437_v34, %v4446_v35  ;;  %5477 = vperm.xlu0 %7386, %v5435_v21   ;;  %v5447_v25 = vld [vmem:[%s8690_s2 + $0x68] sm:$0xff] }
  0xde   : > { %6739 = vmatpush3.bf16.msra.mxu1 %v7565_v47  ;;  %v7572_v47 = vld [vmem:[%s7851_s12 + $0x68] sm:$0xff]  }
  0xdf   : > { %7036 = vmatprep.subr.bf16.mxu1 %v8230_v4  ;;  %v4476_v23 = vshrl.u32 %v7572_v47, 16  ;;  %v4479_v59 = vshll.u32 %v7572_v47, 16  ;;  %5487 = vperm.xlu1 %7387, %v5437_v36   ;;  %v5440_v47 = vld [vmem:[%s8690_s2 + $0x30] sm:$0xff] }
  0xe0   : > { %6705 = vmatmul.mubr.bf16.gmra.mrb[16].mxu1 %v1586_v56  ;;  %v4464_v56 = vor.u32 %v4463_v49, %v4460_v46  ;;  %v4515_v46 = vshll.u32 %v7582_v30, 16  ;;  %v7578_v49 = vld [vmem:[%s7851_s12 + $0x28] sm:$0xff]   ;;  %v7633_v30 = vld [vmem:[%s8689_s1 + $0x118] sm:$0xff]  }
  0xe1   : > { %6949 = vmatmul.mubr.bf16.vlgmr.msra.gmra.mrb[0].mxu0 %v4402_v60  ;;  %6708 = vmatprep.mubr.bf16.mxu1 %v1588_v61  ;;  %v7585_v60 = vld [vmem:[%s8689_s1 + $0x230] sm:$0xff]   ;;  %v4469_v61 = vrot.slane %v4467_v51, 2  ;;  %v4481_v8 = vrot.slane %v4479_v59, 3  ;;  %v5441_v51 = vld [vmem:[%s8690_s2 + $0x38] sm:$0xff] }
  0xe2   : > { %6952 = vmatprep.mubr.bf16.mxu0 %v4411_v0  ;;  %6985 = vmatpush3.bf16.msra.mxu0 %v8148_v24  ;;  %v1592_v24 = vsel %vm1565_vm3, %v1589_v5, %v1591_v6  ;;  %v4472_v0 = vrot.slane %v4470_v53, 3  ;;  %v4478_v5 = vrot.slane %v4476_v23, 2  ;;  %v7577_v6 = vld [vmem:[%s7851_s12 + $0x78] sm:$0xff]   ;;  %v4465_v7 = vsel %vm4376_vm4, %v4455_v54, %v4464_v56  ;;  %v7584_v23 = vld [vmem:[%s7851_s12 + $0x90] sm:$0xff]  }
  0xe3   : > { %6986 = vmatprep.subr.bf16.mxu0 %v7557_v3  ;;  %5497 = vperm.xlu1 %7387, %v5439_v40   ;;  %v4505_v53 = vrot.slane %v4503_v39, 2  ;;  %v4508_v54 = vrot.slane %v4506_v42, 3  ;;  %v4517_v58 = vrot.slane %v4515_v46, 3  ;;  %v7587_v59 = vld [vmem:[%s7851_s12 + $0x98] sm:$0xff]   ;;  %v7591_v40 = vld [vmem:[%s7851_s12 + $0x50] sm:$0xff]  }
  0xe4   : > { %v4473_v13 = vor.u32 %v4472_v0, %v4469_v61  ;;  %v4482_v17 = vor.u32 %v4481_v8, %v4478_v5  ;;  %v2108_v61 = vrot.slane %v7578_v49, 1  ;;  %v4533_v8 = vshll.u32 %v7587_v59, 16  ;;  %v7592_v42 = vld [vmem:[%s7851_s12 + $0x10] sm:$0xf8]  }
  0xe5   : > { %v2118_v49 = vrot.slane %v7591_v40, 1  ;;  %v5464_v40 = vld [vmem:[%s8690_s2 + $0xf0] sm:$0xff] }
  0xe6   : > { %6987 = vmatpush3.bf16.msra.mxu0 %v7557_v3  ;;  %v1600_v3 = vsel %vm1565_vm3, %v1597_v52, %v1599_v55  ;;  %v4474_v26 = vsel %vm4376_vm4, %v4464_v56, %v4473_v13  ;;  %v4483_v32 = vsel %vm4376_vm4, %v4473_v13, %v4482_v17  ;;  %v5445_v13 = vld [vmem:[%s8690_s2 + $0x58] sm:$0xff] }
  0xe7   : > { %6988 = vmatprep.subr.bf16.mxu0 %v7563_v15  ;;  %5507 = vperm.xlu1 %7387, %v5441_v51  }
  0xe8   : > { %6709 = vmatmul.mubr.bf16.gmra.mrb[20].mxu1 %v1590_v18  ;;  %v7573_v18 = vld [vmem:[%s7851_s12 + $0x18] sm:$0xff]  }
  0xe9   : > { %6953 = vmatmul.mubr.bf16.gmra.mrb[4].mxu0 %v4420_v19  ;;  %6712 = vmatprep.mubr.bf16.mxu1 %v1592_v24  ;;  %v4494_v19 = vshrl.u32 %v7577_v6, 16  ;;  %v4497_v24 = vshll.u32 %v7577_v6, 16  ;;  %v2104_v37 = vrot.slane %v7573_v18, 1  ;;  %v8345_v6 = vld [vmem:[%s7851_s12 + $0x40] sm:$0xff]  }
  0xea   : > { %6956 = vmatprep.mubr.bf16.mxu0 %v4429_v22  ;;  %6989 = vmatpush3.bf16.msra.mxu0 %v7563_v15  ;;  %v4488_v15 = vshll.u32 %v7574_v1, 16  ;;  %v1602_v22 = vsel %vm1565_vm3, %v1599_v55, %v1601_v10  ;;  %v4514_v55 = vrot.slane %v4512_v43, 2  ;;  %v4521_v1 = vshrl.u32 %v7584_v23, 16  ;;  %v5444_v10 = vld [vmem:[%s8690_s2 + $0x50] sm:$0xff]  ;;  %v7593_v43 = vld [vmem:[%s7851_s12 + $0x18] sm:$0xff]  }
  0xeb   : > { %6990 = vmatprep.subr.bf16.mxu0 %v7569_v27  ;;  %v4496_v34 = vrot.slane %v4494_v19, 2  ;;  %v4499_v35 = vrot.slane %v4497_v24, 3  ;;  %5517 = vperm.xlu1 %7387, %v5443_v62   ;;  %v4535_v24 = vrot.slane %v4533_v8, 3  ;;  %v5047_v51 = vrot.slane %v7593_v43, 3  ;;  %v7636_v62 = vld [vmem:[%s8689_s1 + $0x130] sm:$0xff]   ;;  %v7598_v8 = vld [vmem:[%s7851_s12 + $0x68] sm:$0xff]  }
  0xec   : > { %v4490_v29 = vrot.slane %v4488_v15, 3  ;;  %v4518_v5 = vor.u32 %v4517_v58, %v4514_v55  ;;  %v4523_v15 = vrot.slane %v4521_v1, 2  ;;  %v7594_v55 = vld [vmem:[%s7851_s12 + $0x58] sm:$0xff]   ;;  %v7595_v58 = vld [vmem:[%s7851_s12 + $0x20] sm:$0xff]   ;;  %v5455_v1 = vld [vmem:[%s8690_s2 + $0xa8] sm:$0xff] }
  0xed   : > { %v5465_v43 = vld [vmem:[%s8690_s2 + $0xf8] sm:$0xff] }
  0xee   : > { %6991 = vmatpush3.bf16.msra.mxu0 %v7569_v27  ;;  %v2103_v27 = vsel %vm1565_vm3, %v2101_v12, %v2102_v11 }
  0xef   : > { %6992 = vmatprep.subr.bf16.mxu0 %v7575_v38  ;;  %5527 = vperm.xlu1 %7387, %v5445_v13   ;;  %v7599_v13 = vld [vmem:[%s7851_s12 + $0x30] sm:$0xff]  }
  0xf0   : > { %6713 = vmatmul.mubr.bf16.gmra.mrb[24].mxu1 %v1594_v41  ;;  %v4491_v41 = vor.u32 %v4490_v29, %v4487_v28 }
  0xf1   : > { %6957 = vmatmul.mubr.bf16.gmra.mrb[8].mxu0 %v4438_v44  ;;  %6716 = vmatprep.mubr.bf16.mxu1 %v1596_v45  ;;  %v2106_v44 = vrot.slane %v8304_v33, 1  ;;  %v4500_v45 = vor.u32 %v4499_v35, %v4496_v34  ;;  %v7588_v34 = vld [vmem:[%s7851_s12 + $0x48] sm:$0xff]   ;;  %v5449_v35 = vld [vmem:[%s8690_s2 + $0x78] sm:$0xff] }
  0xf2   : > { %6960 = vmatprep.mubr.bf16.mxu0 %v4447_v48  ;;  %6993 = vmatpush3.bf16.msra.mxu0 %v7575_v38  ;;  %v5438_v38 = vld [vmem:[%s8690_s2 + $0x20] sm:$0xff]  ;;  %v2105_v48 = vsel %vm1565_vm3, %v2102_v11, %v2104_v37  ;;  %v4492_v52 = vsel %vm4376_vm4, %v4482_v17, %v4491_v41  ;;  %v7632_v17 = vld [vmem:[%s8689_s1 + $0x110] sm:$0xff]   ;;  %v2116_v46 = vrot.slane %v7588_v34, 1 }
  0xf3   : > { %6994 = vmatprep.subr.bf16.mxu0 %v7580_v50  ;;  %5492 = vperm.xlu0 %7386, %v5438_v38   ;;  %v2107_v56 = vsel %vm1565_vm3, %v2104_v37, %v2106_v44  ;;  %v4501_v57 = vsel %vm4376_vm4, %v4491_v41, %v4500_v45  ;;  %v2109_v12 = vsel %vm1565_vm3, %v2106_v44, %v2108_v61  ;;  %v7634_v44 = vld [vmem:[%s8689_s1 + $0x120] sm:$0xff]  }
  0xf4   : > { %5537 = vperm.xlu1 %7387, %v5447_v25   ;;  %v7602_v25 = vld [vmem:[%s7851_s12 + $0x78] sm:$0xff]   ;;  %v5462_v34 = vld [vmem:[%s8690_s2 + $0xe0] sm:$0xff] }
  0xf6   : > { %6995 = vmatpush3.bf16.msra.mxu0 %v7580_v50  ;;  %v8322_v50 = vld [vmem:[%s7851_s12 + $0x30] sm:$0xff]  }
  0xf7   : > { %6996 = vmatprep.subr.bf16.mxu0 %v7585_v60  ;;  %5502 = vperm.xlu0 %7386, %v5440_v47   ;;  %v2110_v0 = vrot.slane %v8322_v50, 1  ;;  %v5451_v47 = vld [vmem:[%s8690_s2 + $0x88] sm:$0xff]  ;;  %v5046_v50 = vrot.slane %v7592_v42, 3 }
  0xf8   : > { %6717 = vmatmul.mubr.bf16.gmra.mrb[28].mxu1 %v1598_v63  ;;  %v4509_v63 = vor.u32 %v4508_v54, %v4505_v53  ;;  %5547 = vperm.xlu1 %7387, %v5449_v35   ;;  %v5452_v53 = vld [vmem:[%s8690_s2 + $0x90] sm:$0xff]  ;;  %v2128_v35 = vrot.slane %v7602_v25, 1  ;;  %v7606_v42 = vld [vmem:[%s7851_s12 + $0x88] sm:$0xff]  }
  0xf9   : > { %6961 = vmatmul.mubr.bf16.gmra.mrb[12].mxu0 %v4456_v2  ;;  %6720 = vmatprep.mubr.bf16.mxu1 %v1600_v3  ;;  %v4524_v2 = vshll.u32 %v7584_v23, 16  ;;  %v7631_v3 = vld [vmem:[%s8689_s1 + $0x108] sm:$0xff]   ;;  %v2111_v14 = vsel %vm1565_vm3, %v2108_v61, %v2110_v0  ;;  %v5453_v23 = vld [vmem:[%s8690_s2 + $0x98] sm:$0xff]  ;;  %v7620_v25 = vld [vmem:[%s7851_s12 + $0x70] sm:$0xff]  }
  0xfa   : > { %6964 = vmatprep.mubr.bf16.mxu0 %v4465_v7  ;;  %6997 = vmatpush3.bf16.msra.mxu0 %v7585_v60  ;;  %v5442_v60 = vld [vmem:[%s8690_s2 + $0x40] sm:$0xff]  ;;  %v4530_v7 = vshrl.u32 %v7587_v59, 16  ;;  %v4510_v11 = vsel %vm4376_vm4, %v4500_v45, %v4509_v63  ;;  %v4519_v18 = vsel %vm4376_vm4, %v4509_v63, %v4518_v5  ;;  %v7597_v61 = vld [vmem:[%s7851_s12 + $0x28] sm:$0xff]  }
  0xfb   : > { %6998 = vmatprep.subr.bf16.mxu0 %v7590_v9  ;;  %5512 = vperm.xlu0 %7386, %v5442_v60   ;;  %v4526_v16 = vrot.slane %v4524_v2, 3  ;;  %v5450_v45 = vld [vmem:[%s8690_s2 + $0x80] sm:$0xff]  ;;  %v5048_v60 = vsel %vm5045_vm5, %v5046_v50, %v5047_v51  ;;  %v5049_v2 = vrot.slane %v7595_v58, 3  ;;  %v7609_v50 = vld [vmem:[%s7851_s12 + $0x58] sm:$0xff]   ;;  %v5468_v58 = vld [vmem:[%s8690_s2 + $0x110] sm:$0xff] }
  0xfc   : > { %v4532_v19 = vrot.slane %v4530_v7, 2  ;;  %5557 = vperm.xlu1 %7387, %v5451_v47   ;;  %v7596_v59 = vld [vmem:[%s7851_s12 + $0x60] sm:$0xff]   ;;  %v7608_v47 = vld [vmem:[%s7851_s12 + $0x90] sm:$0xff]  }
  0xfd   : > { %v5454_v63 = vld [vmem:[%s8690_s2 + $0xa0] sm:$0xff] }
  0xfe   : > { %6999 = vmatpush3.bf16.msra.mxu0 %v7590_v9  ;;  %v7589_v9 = vld [vmem:[%s7851_s12 + $0xa0] ss:$0 sps:$4 sm:$0x77]   ;;  %v4536_v29 = vor.u32 %v4535_v24, %v4532_v19  ;;  %v5053_v19 = vrot.slane %v7599_v13, 3 }
  0xff   : > { %5522 = vperm.xlu0 %7386, %v5444_v10   ;;  %v4542_v28 = vshll.u32 %v7589_v9, 16  ;;  %v5050_v10 = vsel %vm5045_vm5, %v5047_v51, %v5049_v2  ;;  %v5466_v51 = vld [vmem:[%s8690_s2 + $0x100] sm:$0xff] }
 0x100   : > { %6721 = vmatmul.mubr.bf16.gmra.mrb[32].mxu1 %v1602_v22  ;;  %v2114_v22 = vrot.slane %v8345_v6, 1  ;;  %5567 = vperm.xlu1 %7387, %v5453_v23   ;;  %v5456_v6 = vld [vmem:[%s8690_s2 + $0xb0] sm:$0xff] }
 0x101   : > { %6965 = vmatmul.mubr.bf16.gmra.mrb[16].mxu0 %v4474_v26  ;;  %6740 = vmatprep.mubr.bf16.mxu1 %v2103_v27  ;;  %v4527_v26 = vor.u32 %v4526_v16, %v4523_v15  ;;  %v4539_v27 = vshrl.u32 %v7589_v9, 16  ;;  %v4544_v39 = vrot.slane %v4542_v28, 3  ;;  %v5457_v9 = vld [vmem:[%s8690_s2 + $0xb8] sm:$0xff]  ;;  %v5458_v16 = vld [vmem:[%s8690_s2 + $0xc0] sm:$0xff] }
 0x102   : > { %6968 = vmatprep.mubr.bf16.mxu0 %v4483_v32  ;;  %v5448_v32 = vld [vmem:[%s8690_s2 + $0x70] sm:$0xff]  ;;  %v2117_v54 = vsel %vm1565_vm3, %v2114_v22, %v2116_v46  ;;  %v7601_v15 = vld [vmem:[%s7851_s12 + $0x38] sm:$0xff]  }
 0x103   : > { %5532 = vperm.xlu0 %7386, %v5446_v20   ;;  %v4528_v36 = vsel %vm4376_vm4, %v4518_v5, %v4527_v26  ;;  %v4541_v38 = vrot.slane %v4539_v27, 2  ;;  %v4537_v41 = vsel %vm4376_vm4, %v4527_v26, %v4536_v29  ;;  %v5051_v5 = vrot.slane %v7597_v61, 3  ;;  %v5461_v26 = vld [vmem:[%s8690_s2 + $0xd8] sm:$0xff] }
 0x104   : > { %5577 = vperm.xlu1 %7387, %v5455_v1   ;;  %v5055_v20 = vrot.slane %v7601_v15, 3  ;;  %v7614_v61 = vld [vmem:[%s7851_s12 + $0x58] sm:$0xff]   ;;  %v7611_v1 = vld [vmem:[%s7851_s12 + $0x60] sm:$0xff]  }
 0x105   : > { %v5054_v27 = vsel %vm5045_vm5, %v5051_v5, %v5053_v19 }
 0x107   : > { %5542 = vperm.xlu0 %7386, %v5448_v32   ;;  %v5056_v32 = vsel %vm5045_vm5, %v5053_v19, %v5055_v20 }
 0x108   : > { %6741 = vmatmul.mubr.bf16.vlgmr.msra.gmra.mrb[0].mxu1 %v2105_v48  ;;  %v4545_v48 = vor.u32 %v4544_v39, %v4541_v38  ;;  %5587 = vperm.xlu1 %7387, %v5457_v9   ;;  %v2730_v9 = vshll.u32 %v7614_v61, 16 }
 0x109   : > { %6969 = vmatmul.mubr.bf16.gmra.mrb[20].mxu0 %v4492_v52  ;;  %7044 = vmatpush3.bf16.msra.mxu1 %v8230_v4  ;;  %v7583_v4 = vld [vmem:[%s7851_s12 + $0x38] sm:$0xff]   ;;  %v7635_v52 = vld [vmem:[%s8689_s1 + $0x128] sm:$0xff]  }
 0x10a   : > { %6744 = vmatprep.mubr.bf16.mxu1 %v2107_v56  ;;  %6972 = vmatprep.mubr.bf16.mxu0 %v4501_v57  ;;  %v2112_v21 = vrot.slane %v7583_v4, 1  ;;  %v4546_v56 = vsel %vm4376_vm4, %v4536_v29, %v4545_v48  ;;  %v2119_v57 = vsel %vm1565_vm3, %v2116_v46, %v2118_v49  ;;  %v7637_v4 = vld [vmem:[%s8689_s1 + $0x138] sm:$0xff]   ;;  %v7603_v29 = vld [vmem:[%s7851_s12 + $0x40] sm:$0xff]   ;;  %v7607_v46 = vld [vmem:[%s7851_s12 + $0x50] sm:$0xff]  }
 0x10b   : > { %7037 = vmatprep.subr.bf16.mxu1 %v7631_v3  ;;  %5552 = vperm.xlu0 %7386, %v5450_v45   ;;  %v7612_v48 = vld [vmem:[%s7851_s12 + $0x50] sm:$0xff]  }
 0x10c   : > { %v2113_v33 = vsel %vm1565_vm3, %v2110_v0, %v2112_v21  ;;  %v2115_v37 = vsel %vm1565_vm3, %v2112_v21, %v2114_v22  ;;  %v2120_v0 = vrot.slane %v7594_v55, 1  ;;  %v5460_v21 = vld [vmem:[%s8690_s2 + $0xd0] sm:$0xff]  ;;  %v2134_v55 = vrot.slane %v7608_v47, 1  ;;  %v7621_v47 = vld [vmem:[%s7851_s12 + $0x88] sm:$0xff]  }
 0x10d   : > { %7045 = vmatpush3.bf16.msra.mxu1 %v7631_v3  ;;  %v2122_v3 = vrot.slane %v7596_v59, 1  ;;  %v2718_v23 = vshrl.u32 %v7612_v48, 16 }
 0x10e   : > { %7038 = vmatprep.subr.bf16.mxu1 %v7632_v17  ;;  %v2121_v7 = vsel %vm1565_vm3, %v2118_v49, %v2120_v0 }
 0x10f   : > { %5562 = vperm.xlu0 %7386, %v5452_v53   ;;  %v5467_v53 = vld [vmem:[%s8690_s2 + $0x108] sm:$0xff] }
 0x110   : > { %6745 = vmatmul.mubr.bf16.gmra.mrb[4].mxu1 %v2109_v12  ;;  %v2123_v12 = vsel %vm1565_vm3, %v2120_v0, %v2122_v3 }
 0x111   : > { %6973 = vmatmul.mubr.bf16.gmra.mrb[24].mxu0 %v4510_v11  ;;  %6748 = vmatprep.mubr.bf16.mxu1 %v2111_v14  ;;  %v7600_v11 = vld [vmem:[%s7851_s12 + $0x70] sm:$0xff]   ;;  %v5052_v14 = vsel %vm5045_vm5, %v5049_v2, %v5051_v5  ;;  %v2720_v2 = vrot.slane %v2718_v23, 1  ;;  %v7616_v5 = vld [vmem:[%s7851_s12 + $0x60] sm:$0xff]  }
 0x112   : > { %6976 = vmatprep.mubr.bf16.mxu0 %v4519_v18  ;;  %7046 = vmatpush3.bf16.msra.mxu1 %v7632_v17  ;;  %v2124_v17 = vrot.slane %v7598_v8, 1  ;;  %v5459_v18 = vld [vmem:[%s8690_s2 + $0xc8] sm:$0xff]  ;;  %v2126_v24 = vrot.slane %v7600_v11, 1  ;;  %v2727_v8 = vshrl.u32 %v7614_v61, 16  ;;  %v2736_v13 = vshrl.u32 %v7616_v5, 16  ;;  %v7623_v61 = vld [vmem:[%s7851_s12 + $0x90] sm:$0xff]  }
 0x113   : > { %7039 = vmatprep.subr.bf16.mxu1 %v7633_v30  ;;  %5572 = vperm.xlu0 %7386, %v5454_v63   ;;  %v2739_v11 = vshll.u32 %v7616_v5, 16 }
 0x114   : > { %5597 = vperm.xlu1 %7387, %v5459_v18   ;;  %v2125_v22 = vsel %vm1565_vm3, %v2122_v3, %v2124_v17  ;;  %v2127_v28 = vsel %vm1565_vm3, %v2124_v17, %v2126_v24  ;;  %v2732_v17 = vrot.slane %v2730_v9, 2  ;;  %v7618_v18 = vld [vmem:[%s7851_s12 + $0x68] sm:$0xff]  }
 0x116   : > { %7047 = vmatpush3.bf16.msra.mxu1 %v7633_v30  ;;  %v7604_v30 = vld [vmem:[%s7851_s12 + $0x80] sm:$0xff]  }
 0x117   : > { %7040 = vmatprep.subr.bf16.mxu1 %v7634_v44  ;;  %5582 = vperm.xlu0 %7386, %v5456_v6   ;;  %v2130_v38 = vrot.slane %v7604_v30, 1  ;;  %v7613_v6 = vld [vmem:[%s7851_s12 + $0x68] sm:$0xff]   ;;  %v2748_v30 = vshll.u32 %v7618_v18, 16 }
 0x118   : > { %6749 = vmatmul.mubr.bf16.gmra.mrb[8].mxu1 %v2113_v33  ;;  %v7605_v33 = vld [vmem:[%s7851_s12 + $0x48] sm:$0xff]   ;;  %5607 = vperm.xlu1 %7387, %v5461_v26  }
 0x119   : > { %6977 = vmatmul.mubr.bf16.gmra.mrb[28].mxu0 %v4528_v36  ;;  %6752 = vmatprep.mubr.bf16.mxu1 %v2115_v37  ;;  %v5463_v36 = vld [vmem:[%s8690_s2 + $0xe8] sm:$0xff]  ;;  %v5057_v37 = vrot.slane %v7603_v29, 3  ;;  %v5059_v39 = vrot.slane %v7605_v33, 3  ;;  %v2131_v45 = vsel %vm1565_vm3, %v2128_v35, %v2130_v38  ;;  %v2745_v29 = vshrl.u32 %v7618_v18, 16 }
 0x11a   : > { %6980 = vmatprep.mubr.bf16.mxu0 %v4537_v41  ;;  %7048 = vmatpush3.bf16.msra.mxu1 %v7634_v44  ;;  %v2129_v41 = vsel %vm1565_vm3, %v2126_v24, %v2128_v35  ;;  %v2754_v33 = vshrl.u32 %v7620_v25, 16 }
 0x11b   : > { %7041 = vmatprep.subr.bf16.mxu1 %v7635_v52  ;;  %5592 = vperm.xlu0 %7386, %v5458_v16   ;;  %v5058_v44 = vsel %vm5045_vm5, %v5055_v20, %v5057_v37  ;;  %v5060_v49 = vsel %vm5045_vm5, %v5057_v37, %v5059_v39  ;;  %v2729_v16 = vrot.slane %v2727_v8, 1  ;;  %v7615_v20 = vld [vmem:[%s7851_s12 + $0x70] sm:$0xff]   ;;  %v2747_v37 = vrot.slane %v2745_v29, 1 }
 0x11c   : > { %5617 = vperm.xlu1 %7387, %v5463_v36  }
 0x11e   : > { %7049 = vmatpush3.bf16.msra.mxu1 %v7635_v52  ;;  %v2132_v52 = vrot.slane %v7606_v42, 1  ;;  %v7619_v42 = vld [vmem:[%s7851_s12 + $0x80] sm:$0xff]  }
 0x11f   : > { %7042 = vmatprep.subr.bf16.mxu1 %v7636_v62  ;;  %5602 = vperm.xlu0 %7386, %v5460_v21   ;;  %v2738_v21 = vrot.slane %v2736_v13, 1 }
 0x120   : > { %6753 = vmatmul.mubr.bf16.gmra.mrb[12].mxu1 %v2117_v54  ;;  %5627 = vperm.xlu1 %7387, %v5465_v43   ;;  %v5061_v54 = vrot.slane %v7607_v46, 3  ;;  %v2133_v59 = vsel %vm1565_vm3, %v2130_v38, %v2132_v52  ;;  %v2135_v0 = vsel %vm1565_vm3, %v2132_v52, %v2134_v55  ;;  %v2750_v38 = vrot.slane %v2748_v30, 2 }
 0x121   : > { %6981 = vmatmul.mubr.bf16.gmra.mrb[32].mxu0 %v4546_v56  ;;  %6756 = vmatprep.mubr.bf16.mxu1 %v2119_v57  ;;  %v2721_v56 = vshll.u32 %v7612_v48, 16  ;;  %v5063_v57 = vrot.slane %v7609_v50, 3  ;;  %v2756_v43 = vrot.slane %v2754_v33, 1 }
 0x122   : > { %7000 = vmatprep.mubr.bf16.mxu0 %v5048_v60  ;;  %7050 = vmatpush3.bf16.msra.mxu1 %v7636_v62  ;;  %v7610_v60 = vld [vmem:[%s7851_s12 + $0x98] ss:$0 sps:$4 sm:$0x11]   ;;  %v5062_v63 = vsel %vm5045_vm5, %v5059_v39, %v5061_v54  ;;  %v2751_v48 = vor.u32 %v2750_v38, %v2747_v37 }
 0x123   : > { %7043 = vmatprep.subr.bf16.mxu1 %v7637_v4  ;;  %5612 = vperm.xlu0 %7386, %v5462_v34   ;;  %v5469_v62 = vld [vmem:[%s8690_s2 + $0x118] sm:$0xff]  ;;  %v2723_v3 = vrot.slane %v2721_v56, 2  ;;  %v2757_v34 = vshll.u32 %v7620_v25, 16 }
 0x124   : > { %5637 = vperm.xlu1 %7387, %v5467_v53   ;;  %v7622_v39 = vld [vmem:[%s7851_s12 + $0x78] sm:$0xff]  }
 0x125   : > { %v2766_v50 = vshll.u32 %v7622_v39, 16 }
 0x126   : > { %7051 = vmatpush3.bf16.msra.mxu1 %v7637_v4  ;;  %v5064_v4 = vsel %vm5045_vm5, %v5061_v54, %v5063_v57 }
 0x127   : > { %5622 = vperm.xlu0 %7386, %v5464_v40  }
 0x128   : > { %6757 = vmatmul.mubr.bf16.gmra.mrb[16].mxu1 %v2121_v7  ;;  %5647 = vperm.xlu1 %7387, %v5469_v62   ;;  %v2136_v7 = vrot.slane %v7610_v60, 1 }
 0x129   : > { %7001 = vmatmul.mubr.bf16.vlgmr.msra.gmra.mrb[0].mxu0 %v5050_v10  ;;  %6760 = vmatprep.mubr.bf16.mxu1 %v2123_v12  ;;  %v5065_v10 = vrot.slane %v7611_v1, 3  ;;  %v2724_v12 = vor.u32 %v2723_v3, %v2720_v2  ;;  %v7625_v2 = vld [vmem:[%s7851_s12 + $0x98] sm:$0xff]  }
 0x12a   : > { %7004 = vmatprep.mubr.bf16.mxu0 %v5052_v14  ;;  %v5067_v14 = vrot.slane %v7613_v6, 3  ;;  %v2137_v15 = vsel %vm1565_vm3, %v2134_v55, %v2136_v7  ;;  %v5075_v55 = vrot.slane %v7621_v47, 3  ;;  %v5077_v6 = vrot.slane %v7623_v61, 3 }
 0x12b   : > { %5632 = vperm.xlu0 %7386, %v5466_v51   ;;  %v5066_v19 = vsel %vm5045_vm5, %v5063_v57, %v5065_v10  ;;  %v2725_v24 = vsel %vm2636_vm0, %v7920_v31, %v2724_v12  ;;  %v5073_v51 = vrot.slane %v7619_v42, 3  ;;  %v2768_v57 = vrot.slane %v2766_v50, 2 }
 0x12c   : > { %v5068_v26 = vsel %vm5045_vm5, %v5065_v10, %v5067_v14  ;;  %v5079_v10 = vrot.slane %v7625_v2, 3 }
 0x12d   : > { %v5076_v1 = vsel %vm5045_vm5, %v5073_v51, %v5075_v55 }
 0x12f   : > { %5642 = vperm.xlu0 %7386, %v5468_v58   ;;  %v7626_v58 = vld [vmem:[%s7851_s12 + $0x88] sm:$0xff]  }
 0x130   : > { %6761 = vmatmul.mubr.bf16.gmra.mrb[20].mxu1 %v2125_v22  ;;  %v2741_v22 = vrot.slane %v2739_v11, 2  ;;  %v2781_v5 = vshrl.u32 %v7626_v58, 16 }
 0x131   : > { %7005 = vmatmul.mubr.bf16.gmra.mrb[4].mxu0 %v5054_v27  ;;  %6764 = vmatprep.mubr.bf16.mxu1 %v2127_v28  ;;  %v7617_v27 = vld [vmem:[%s7851_s12 + $0x78] sm:$0xff]   ;;  %v2733_v28 = vor.u32 %v2732_v17, %v2729_v16  ;;  %v7627_v17 = vld [vmem:[%s7851_s12 + $0xa0] ss:$0 sps:$4 sm:$0x77]  }
 0x132   : > { %7008 = vmatprep.mubr.bf16.mxu0 %v5056_v32  ;;  %v5069_v32 = vrot.slane %v7615_v20, 3  ;;  %v2742_v31 = vor.u32 %v2741_v22, %v2738_v21  ;;  %v5071_v35 = vrot.slane %v7617_v27, 3  ;;  %v2783_v13 = vrot.slane %v2781_v5, 1 }
 0x133   : > { %v2734_v36 = vsel %vm2636_vm0, %v2724_v12, %v2733_v28  ;;  %v5081_v25 = vrot.slane %v7627_v17, 3 }
 0x134   : > { %v5070_v40 = vsel %vm5045_vm5, %v5067_v14, %v5069_v32  ;;  %v5072_v46 = vsel %vm5045_vm5, %v5069_v32, %v5071_v35  ;;  %v2752_v23 = vsel %vm2636_vm0, %v2742_v31, %v2751_v48  ;;  %v7629_v14 = vld [vmem:[%s7851_s12 + $0x98] ss:$0 sps:$4 sm:$0x33]  }
 0x135   : > { %v2799_v21 = vshrl.u32 %v7629_v14, 16  ;;  %v2802_v22 = vshll.u32 %v7629_v14, 16  ;;  %v5082_v30 = vsel %vm5045_vm5, %v5079_v10, %v5081_v25 }
 0x137   : > { %v2804_v29 = vrot.slane %v2802_v22, 2 }
 0x138   : > { %6765 = vmatmul.mubr.bf16.gmra.mrb[24].mxu1 %v2129_v41  ;;  %v2743_v41 = vsel %vm2636_vm0, %v2733_v28, %v2742_v31  ;;  %v2801_v28 = vrot.slane %v2799_v21, 1 }
 0x139   : > { %7009 = vmatmul.mubr.bf16.gmra.mrb[8].mxu0 %v5058_v44  ;;  %6768 = vmatprep.mubr.bf16.mxu1 %v2131_v45  ;;  %v2759_v44 = vrot.slane %v2757_v34, 2  ;;  %v7624_v45 = vld [vmem:[%s7851_s12 + $0x80] sm:$0xff]  }
 0x13a   : > { %7012 = vmatprep.mubr.bf16.mxu0 %v5060_v49  ;;  %v2763_v49 = vshrl.u32 %v7622_v39, 16  ;;  %v2772_v53 = vshrl.u32 %v7624_v45, 16  ;;  %v2775_v54 = vshll.u32 %v7624_v45, 16  ;;  %v2805_v31 = vor.u32 %v2804_v29, %v2801_v28 }
 0x13b   : > { %v2760_v52 = vor.u32 %v2759_v44, %v2756_v43 }
 0x13c   : > { %v2765_v56 = vrot.slane %v2763_v49, 1  ;;  %v2774_v62 = vrot.slane %v2772_v53, 1 }
 0x13d   : > { %v2761_v60 = vsel %vm2636_vm0, %v2751_v48, %v2760_v52 }
 0x13e   : > { %v2769_v3 = vor.u32 %v2768_v57, %v2765_v56 }
 0x140   : > { %6769 = vmatmul.mubr.bf16.gmra.mrb[28].mxu1 %v2133_v59  ;;  %v5074_v59 = vsel %vm5045_vm5, %v5071_v35, %v5073_v51  ;;  %v2770_v12 = vsel %vm2636_vm0, %v2760_v52, %v2769_v3 }
 0x141   : > { %7013 = vmatmul.mubr.bf16.gmra.mrb[12].mxu0 %v5062_v63  ;;  %6772 = vmatprep.mubr.bf16.mxu1 %v2135_v0  ;;  %v2777_v63 = vrot.slane %v2775_v54, 2  ;;  %v7628_v0 = vld [vmem:[%s7851_s12 + $0x90] sm:$0xff]   ;;  %s8604_s12 = sand.u32 1, %s7724_s16  }
 0x142   : > { %7016 = vmatprep.mubr.bf16.mxu0 %v5064_v4  ;;  %v2784_v4 = vshll.u32 %v7626_v58, 16  ;;  %v2790_v8 = vshrl.u32 %v7628_v0, 16  ;;  %v2793_v9 = vshll.u32 %v7628_v0, 16  ;;  %s193_s14 = scalar_lea.vmem [#allocation3], %s8604_s12  ;;  %s199_s22 = scalar_lea.vmem [#allocation5], %s8604_s12 }
 0x143   : > { %v2778_v7 = vor.u32 %v2777_v63, %v2774_v62  ;;  %s5859_s20 = sshll.u32 %s193_s14, 4  ;;  %s5872_s23 = sshll.u32 %s199_s22, 4  ;;  %s8616_s20 = int_to_ptr.vmem [resolvable:$true] %s5859_s20  ;;  %s8623_s23 = int_to_ptr.vmem [resolvable:$true] %s5872_s23 }
 0x144   : > { %v2786_v11 = vrot.slane %v2784_v4, 2  ;;  %v2792_v18 = vrot.slane %v2790_v8, 1  ;;  %s5843_s6 = scalar_lea.sflag [#allocation4], %s8604_s12  ;;  %s7638_s7 = scalar_lea.vmem %s8616_s20, 16 }
 0x145   : > { %v2779_v16 = vsel %vm2636_vm0, %v2769_v3, %v2778_v7  ;;  %p7639_p11 = scmp.ne.s32.totalorder %s8616_s20, %s7638_s7  ;;  %p7645_p0 = scmp.lt.s32.totalorder %s8616_s20, %s7643_s9 }
 0x146   : > { %v2787_v20 = vor.u32 %v2786_v11, %v2783_v13  ;;  %p7646_p1 = scmp.lt.s32.totalorder %s7644_s10, %s7638_s7 }
 0x147   : > { %p7640_p12 = pnand %p7639_p11, %p7800_p5 }
 0x148   : > { %6773 = vmatmul.mubr.bf16.gmra.mrb[32].mxu1 %v2137_v15  ;;  %v5078_v15 = vsel %vm5045_vm5, %v5075_v55, %v5077_v6  ;;  %v2788_v27 = vsel %vm2636_vm0, %v2778_v7, %v2787_v20  ;;  %p7647_p2 = por %p7646_p1, %p7645_p0 }
 0x149   : > { %7017 = vmatmul.mubr.bf16.gmra.mrb[16].mxu0 %v5066_v19  ;;  %6808 = vmatprep.mubr.bf16.mxu1 %v2725_v24  ;;  %v2795_v19 = vrot.slane %v2793_v9, 2  ;;  %v5080_v24 = vsel %vm5045_vm5, %v5077_v6, %v5079_v10  ;;  %p7641_p13 = pneg %p7640_p12 }
 0x14a   : > { %7020 = vmatprep.mubr.bf16.mxu0 %v5068_v26  ;;  %v5473_v34 = vpop.permute.xlu0 %5472 }
 0x14b   : > { %v2796_v26 = vor.u32 %v2795_v19, %v2792_v18  ;;  %p7648_p3 = pnand %p7647_p2, %p7641_p13 }
 0x14d   : > { %v2797_v32 = vsel %vm2636_vm0, %v2787_v20, %v2796_v26  ;;  %v2806_v33 = vsel %vm2636_vm0, %v2796_v26, %v2805_v31 }
 0x150   : > { %6809 = vmatmul.mubr.bf16.vlgmr.msra.gmra.mrb[16].mxu1 %v2734_v36 }
 0x151   : > { %7021 = vmatmul.mubr.bf16.gmra.mrb[20].mxu0 %v5070_v40  ;;  %6812 = vmatprep.mubr.bf16.mxu1 %v2743_v41 }
 0x152   : > { %7024 = vmatprep.mubr.bf16.mxu0 %v5072_v46 }
 0x158   : > { %6813 = vmatmul.mubr.bf16.gmra.mrb[20].mxu1 %v2752_v23 }
 0x159   : > { %7025 = vmatmul.mubr.bf16.gmra.mrb[24].mxu0 %v5074_v59  ;;  %6816 = vmatprep.mubr.bf16.mxu1 %v2761_v60 }
 0x15a   : > { %7028 = vmatprep.mubr.bf16.mxu0 %v5076_v1  ;;  %v5483_v35 = vpop.permute.xlu1 %5482 }
 0x15b   : > { %v5478_v40 = vpop.permute.xlu0 %5477 }
 0x15e   : > { %v5488_v41 = vpop.permute.xlu1 %5487 }
 0x160   : > { %6817 = vmatmul.mubr.bf16.gmra.mrb[24].mxu1 %v2770_v12 }
 0x161   : > { %7029 = vmatmul.mubr.bf16.gmra.mrb[28].mxu0 %v5078_v15  ;;  %6820 = vmatprep.mubr.bf16.mxu1 %v2779_v16 }
 0x162   : > { %7032 = vmatprep.mubr.bf16.mxu0 %v5080_v24  ;;  %v5498_v47 = vpop.permute.xlu1 %5497 }
 0x166   : > { %v5508_v51 = vpop.permute.xlu1 %5507 }
 0x168   : > { %6821 = vmatmul.mubr.bf16.gmra.mrb[28].mxu1 %v2788_v27 }
 0x169   : > { %7033 = vmatmul.mubr.bf16.gmra.mrb[32].mxu0 %v5082_v30  ;;  %6824 = vmatprep.mubr.bf16.mxu1 %v2797_v32 }
 0x16a   : > { %v8542_v55 = vpop.permute.xlu1 %5517 }
 0x16e   : > { %v8554_v60 = vpop.permute.xlu1 %5527 }
 0x170   : > { %6825 = vmatmul.mubr.bf16.gmra.mrb[32].mxu1 %v2806_v33 }
 0x172   : > { %v5493_v45 = vpop.permute.xlu0 %5492 }
 0x173   : > { %v8558_v3 = vpop.permute.xlu1 %5537 }
 0x176   : > { %v5503_v49 = vpop.permute.xlu0 %5502 }
 0x177   : > { %v8562_v16 = vpop.permute.xlu1 %5547 }
 0x17a   : > { %v8540_v54 = vpop.permute.xlu0 %5512 }
 0x17e   : > { %v8552_v59 = vpop.permute.xlu0 %5522 }
 0x182   : > { %v8556_v0 = vpop.permute.xlu0 %5532 }
 0x186   : > { %v8560_v12 = vpop.permute.xlu0 %5542 }
 0x18a   : > { %v8564_v33 = vpop.permute.xlu0 %5552 }
 0x1db   : > { %v6742_v36 = vpop.f32.mrb[0].mxu1 }
 0x1dc   : > { %v2238_v37 = vpop.f32.mrb[1].mxu1 }
 0x1dd   : > { %v6743_v38 = vpop.f32.mrb[2].mxu1 }
 0x1de   : > { %v2241_v39 = vpop.f32.mrb[3].mxu1 }
 0x1e3   : > { %v6746_v42 = vpop.f32.mrb[4].mxu1 }
 0x1e4   : > { %v2254_v43 = vpop.f32.mrb[5].mxu1 }
 0x1e5   : > { %v6747_v44 = vpop.f32.mrb[6].mxu1 }
 0x1e6   : > { %v2257_v46 = vpop.f32.mrb[7].mxu1 }
 0x1eb   : > { %v6750_v48 = vpop.f32.mrb[8].mxu1 }
 0x1ec   : > { %v8534_v50 = vpop.f32.mrb[9].mxu1 }
 0x1ed   : > { %v8536_v52 = vpop.f32.mrb[10].mxu1 }
 0x1ee   : > { %v8538_v53 = vpop.f32.mrb[11].mxu1 }
 0x1f3   : > { %v8544_v23 = vpop.f32.mrb[12].mxu1 }
 0x1f4   : > { %v8546_v56 = vpop.f32.mrb[13].mxu1 }
 0x1f5   : > { %v8548_v57 = vpop.f32.mrb[14].mxu1 }
 0x1f6   : > { %v8550_v58 = vpop.f32.mrb[15].mxu1 }
 0x1fc   : > { %v7002_v61 = vpop.f32.mrb[0].mxu0 }
 0x1fd   : > { %v7052_v62 = vadd.f32 %v7002_v61, %v6742_v36  ;;  %v5183_v63 = vpop.f32.mrb[1].mxu0 }
 0x1fe   : > { %v7053_v1 = vadd.f32 %v5183_v63, %v2238_v37  ;;  %v7003_v2 = vpop.f32.mrb[2].mxu0 }
 0x1ff   : > { %v7054_v5 = vadd.f32 %v7003_v2, %v6743_v38  ;;  %v5186_v4 = vpop.f32.mrb[3].mxu0  ;;  %v5652_v8 = vmul.f32 %v7052_v62, %v5483_v35  ;;  %v8566_v38 = vpop.permute.xlu1 %5557 }
 0x200   : > { %v5650_v6 = vmul.f32 %v7053_v1, %v5473_v34  ;;  %v7055_v7 = vadd.f32 %v5186_v4, %v2241_v39 }
 0x201   : > { %v5653_v10 = vmul.f32 %v7054_v5, %v5488_v41  ;;  %v5766_v19 = vmul.f32 %v7052_v62, %v5652_v8 }
 0x202   : > { %v5651_v9 = vmul.f32 %v7055_v7, %v5478_v40  ;;  %v5764_v13 = vmul.f32 %v7053_v1, %v5650_v6 }
 0x203   : > { %v5767_v25 = vmul.f32 %v7054_v5, %v5653_v10 }
 0x204   : > { %v5686_v11 = vadd.f32 %v5651_v9, %v5650_v6  ;;  %v5765_v14 = vmul.f32 %v7055_v7, %v5651_v9  ;;  %v7006_v15 = vpop.f32.mrb[4].mxu0 }
 0x205   : > { %v7056_v17 = vadd.f32 %v7006_v15, %v6746_v42  ;;  %v5199_v18 = vpop.f32.mrb[5].mxu0 }
 0x206   : > { %v5687_v24 = vadd.f32 %v5686_v11, %v5652_v8  ;;  %v5800_v20 = vadd.f32 %v5765_v14, %v5764_v13  ;;  %v7057_v21 = vadd.f32 %v5199_v18, %v2254_v43  ;;  %v7007_v22 = vpop.f32.mrb[6].mxu0 }
 0x207   : > { %v7058_v26 = vadd.f32 %v7007_v22, %v6747_v44  ;;  %v5202_v27 = vpop.f32.mrb[7].mxu0  ;;  %v5656_v31 = vmul.f32 %v7056_v17, %v5503_v49 }
 0x208   : > { %v5801_v28 = vadd.f32 %v5800_v20, %v5766_v19  ;;  %v5654_v29 = vmul.f32 %v7057_v21, %v5493_v45  ;;  %v5688_v30 = vadd.f32 %v5687_v24, %v5653_v10  ;;  %v7059_v32 = vadd.f32 %v5202_v27, %v2257_v46 }
 0x209   : > { %v5657_v39 = vmul.f32 %v7058_v26, %v5508_v51  ;;  %v5770_v62 = vmul.f32 %v7056_v17, %v5656_v31 }
 0x20a   : > { %v5689_v34 = vadd.f32 %v5688_v30, %v5654_v29  ;;  %v5768_v35 = vmul.f32 %v7057_v21, %v5654_v29  ;;  %v5802_v36 = vadd.f32 %v5801_v28, %v5767_v25  ;;  %v5655_v37 = vmul.f32 %v7059_v32, %v5498_v47  ;;  %v8570_v47 = vpop.permute.xlu0 %5562 }
 0x20b   : > { %v5771_v1 = vmul.f32 %v7058_v26, %v5657_v39 }
 0x20c   : > { %v5803_v40 = vadd.f32 %v5802_v36, %v5768_v35  ;;  %v5690_v41 = vadd.f32 %v5689_v34, %v5655_v37  ;;  %v5769_v42 = vmul.f32 %v7059_v32, %v5655_v37  ;;  %v7010_v43 = vpop.f32.mrb[8].mxu0 }
 0x20d   : > { %v7060_v44 = vadd.f32 %v7010_v43, %v6750_v48  ;;  %v5215_v61 = vpop.f32.mrb[9].mxu0  ;;  %v8574_v48 = vpop.permute.xlu1 %5567 }
 0x20e   : > { %v5691_v45 = vadd.f32 %v5690_v41, %v5656_v31  ;;  %v5804_v63 = vadd.f32 %v5803_v40, %v5769_v42  ;;  %v7061_v46 = vadd.f32 %v5215_v61, %v8534_v50  ;;  %v7011_v49 = vpop.f32.mrb[10].mxu0  ;;  %v8580_v19 = vpop.permute.xlu0 %5572 }
 0x20f   : > { %v7062_v2 = vadd.f32 %v7011_v49, %v8536_v52  ;;  %v5218_v5 = vpop.f32.mrb[11].mxu0  ;;  %v5660_v8 = vmul.f32 %v7060_v44, %v8552_v59 }
 0x210   : > { %v5805_v4 = vadd.f32 %v5804_v63, %v5770_v62  ;;  %v5658_v51 = vmul.f32 %v7061_v46, %v8540_v54  ;;  %v5692_v6 = vadd.f32 %v5691_v45, %v5657_v39  ;;  %v7063_v7 = vadd.f32 %v5218_v5, %v8538_v53 }
 0x211   : > { %v5661_v52 = vmul.f32 %v7062_v2, %v8554_v60  ;;  %v5774_v53 = vmul.f32 %v7060_v44, %v5660_v8  ;;  %v8583_v22 = vpop.permute.xlu1 %5577 }
 0x212   : > { %v5693_v9 = vadd.f32 %v5692_v6, %v5658_v51  ;;  %v5772_v10 = vmul.f32 %v7061_v46, %v5658_v51  ;;  %v5806_v50 = vadd.f32 %v5805_v4, %v5771_v1  ;;  %v5659_v13 = vmul.f32 %v7063_v7, %v8542_v55  ;;  %v5583_v34 = vpop.permute.xlu0 %5582 }
 0x213   : > { %v5775_v55 = vmul.f32 %v7062_v2, %v5661_v52 }
 0x214   : > { %v5807_v11 = vadd.f32 %v5806_v50, %v5772_v10  ;;  %v5694_v14 = vadd.f32 %v5693_v9, %v5659_v13  ;;  %v5773_v15 = vmul.f32 %v7063_v7, %v5659_v13  ;;  %v7014_v17 = vpop.f32.mrb[12].mxu0 }
 0x215   : > { %v7064_v54 = vadd.f32 %v7014_v17, %v8544_v23  ;;  %v5231_v18 = vpop.f32.mrb[13].mxu0  ;;  %v5588_v40 = vpop.permute.xlu1 %5587 }
 0x216   : > { %v5695_v24 = vadd.f32 %v5694_v14, %v5660_v8  ;;  %v5808_v20 = vadd.f32 %v5807_v11, %v5773_v15  ;;  %v7065_v59 = vadd.f32 %v5231_v18, %v8546_v56  ;;  %v7015_v21 = vpop.f32.mrb[14].mxu0  ;;  %v8591_v45 = vpop.permute.xlu0 %5592 }
 0x217   : > { %v7066_v60 = vadd.f32 %v7015_v21, %v8548_v57  ;;  %v5234_v25 = vpop.f32.mrb[15].mxu0  ;;  %v5664_v29 = vmul.f32 %v7064_v54, %v8560_v12 }
 0x218   : > { %v5809_v26 = vadd.f32 %v5808_v20, %v5774_v53  ;;  %v5662_v27 = vmul.f32 %v7065_v59, %v8556_v0  ;;  %v5696_v28 = vadd.f32 %v5695_v24, %v5661_v52  ;;  %v7067_v23 = vadd.f32 %v5234_v25, %v8550_v58 }
 0x219   : > { %v5665_v36 = vmul.f32 %v7066_v60, %v8562_v16  ;;  %v5778_v0 = vmul.f32 %v7064_v54, %v5664_v29  ;;  %v8593_v63 = vpop.permute.xlu1 %5597 }
 0x21a   : > { %v5697_v30 = vadd.f32 %v5696_v28, %v5662_v27  ;;  %v5776_v32 = vmul.f32 %v7065_v59, %v5662_v27  ;;  %v5810_v31 = vadd.f32 %v5809_v26, %v5775_v55  ;;  %v5663_v56 = vmul.f32 %v7067_v23, %v8558_v3  ;;  %v5603_v14 = vpop.permute.xlu0 %5602 }
 0x21b   : > { %v5779_v12 = vmul.f32 %v7066_v60, %v5665_v36 }
 0x21c   : > { %v5811_v35 = vadd.f32 %v5810_v31, %v5776_v32  ;;  %v5698_v37 = vadd.f32 %v5697_v30, %v5663_v56  ;;  %v5777_v57 = vmul.f32 %v7067_v23, %v5663_v56  ;;  %v7018_v39 = vpop.f32.mrb[16].mxu0 }
 0x21d   : > { %v5247_v41 = vpop.f32.mrb[17].mxu0  ;;  %v5608_v17 = vpop.permute.xlu1 %5607 }
 0x21e   : > { %v5699_v42 = vadd.f32 %v5698_v37, %v5664_v29  ;;  %v5812_v43 = vadd.f32 %v5811_v35, %v5777_v57  ;;  %v7019_v58 = vpop.f32.mrb[18].mxu0 }
 0x21f   : > { %v5250_v44 = vpop.f32.mrb[19].mxu0 }
 0x220   : > { %v5813_v61 = vadd.f32 %v5812_v43, %v5778_v0  ;;  %v5700_v62 = vadd.f32 %v5699_v42, %v5665_v36 }
 0x221   : > { %v5618_v0 = vpop.permute.xlu1 %5617 }
 0x222   : > { %v5814_v3 = vadd.f32 %v5813_v61, %v5779_v12 }
 0x223   : > { %v6810_v46 = vpop.f32.mrb[16].mxu1 }
 0x224   : > { %v7068_v16 = vadd.f32 %v7018_v39, %v6810_v46  ;;  %v7022_v49 = vpop.f32.mrb[20].mxu0  ;;  %v2971_v1 = vpop.f32.mrb[17].mxu1 }
 0x225   : > { %v7069_v2 = vadd.f32 %v5247_v41, %v2971_v1  ;;  %v5263_v5 = vpop.f32.mrb[21].mxu0  ;;  %v6811_v4 = vpop.f32.mrb[18].mxu1 }
 0x226   : > { %v7070_v51 = vadd.f32 %v7019_v58, %v6811_v4  ;;  %v7023_v6 = vpop.f32.mrb[22].mxu0  ;;  %v2974_v7 = vpop.f32.mrb[19].mxu1  ;;  %v5668_v50 = vmul.f32 %v7068_v16, %v8570_v47 }
 0x227   : > { %v5666_v8 = vmul.f32 %v7069_v2, %v8564_v33  ;;  %v7071_v9 = vadd.f32 %v5250_v44, %v2974_v7  ;;  %v5266_v10 = vpop.f32.mrb[23].mxu0  ;;  %v5613_v39 = vpop.permute.xlu0 %5612 }
 0x228   : > { %v5669_v15 = vmul.f32 %v7070_v51, %v8574_v48  ;;  %v5782_v33 = vmul.f32 %v7068_v16, %v5668_v50 }
 0x229   : > { %v5701_v13 = vadd.f32 %v5700_v62, %v5666_v8  ;;  %v5780_v52 = vmul.f32 %v7069_v2, %v5666_v8  ;;  %v5667_v11 = vmul.f32 %v7071_v9, %v8566_v38 }
 0x22a   : > { %v5783_v27 = vmul.f32 %v7070_v51, %v5669_v15 }
 0x22b   : > { %v5815_v54 = vadd.f32 %v5814_v3, %v5780_v52  ;;  %v5702_v18 = vadd.f32 %v5701_v13, %v5667_v11  ;;  %v5781_v53 = vmul.f32 %v7071_v9, %v5667_v11  ;;  %v6814_v24 = vpop.f32.mrb[20].mxu1  ;;  %v5623_v52 = vpop.permute.xlu0 %5622 }
 0x22c   : > { %v7072_v20 = vadd.f32 %v7022_v49, %v6814_v24  ;;  %v7026_v59 = vpop.f32.mrb[24].mxu0  ;;  %v2987_v21 = vpop.f32.mrb[21].mxu1 }
 0x22d   : > { %v5703_v55 = vadd.f32 %v5702_v18, %v5668_v50  ;;  %v5816_v60 = vadd.f32 %v5815_v54, %v5781_v53  ;;  %v7073_v25 = vadd.f32 %v5263_v5, %v2987_v21  ;;  %v5279_v47 = vpop.f32.mrb[25].mxu0  ;;  %v6815_v26 = vpop.f32.mrb[22].mxu1 }
 0x22e   : > { %v7074_v28 = vadd.f32 %v7023_v6, %v6815_v26  ;;  %v7027_v38 = vpop.f32.mrb[26].mxu0  ;;  %v2990_v23 = vpop.f32.mrb[23].mxu1  ;;  %v5672_v56 = vmul.f32 %v7072_v20, %v5583_v34 }
 0x22f   : > { %v5817_v29 = vadd.f32 %v5816_v60, %v5782_v33  ;;  %v5670_v48 = vmul.f32 %v7073_v25, %v8580_v19  ;;  %v5704_v30 = vadd.f32 %v5703_v55, %v5669_v15  ;;  %v7075_v32 = vadd.f32 %v5266_v10, %v2990_v23  ;;  %v5282_v31 = vpop.f32.mrb[27].mxu0  ;;  %v5628_v15 = vpop.permute.xlu1 %5627 }
 0x230   : > { %v5673_v41 = vmul.f32 %v7074_v28, %v5588_v40  ;;  %v5786_v19 = vmul.f32 %v7072_v20, %v5672_v56 }
 0x231   : > { %v5705_v35 = vadd.f32 %v5704_v30, %v5670_v48  ;;  %v5784_v36 = vmul.f32 %v7073_v25, %v5670_v48  ;;  %v5818_v37 = vadd.f32 %v5817_v29, %v5783_v27  ;;  %v5671_v57 = vmul.f32 %v7075_v32, %v8583_v22  ;;  %v5633_v30 = vpop.permute.xlu0 %5632 }
 0x232   : > { %v5787_v1 = vmul.f32 %v7074_v28, %v5673_v41 }
 0x233   : > { %v5819_v42 = vadd.f32 %v5818_v37, %v5784_v36  ;;  %v5706_v43 = vadd.f32 %v5705_v35, %v5671_v57  ;;  %v5785_v58 = vmul.f32 %v7075_v32, %v5671_v57  ;;  %v6818_v44 = vpop.f32.mrb[24].mxu1 }
 0x234   : > { %v7076_v12 = vadd.f32 %v7026_v59, %v6818_v44  ;;  %v7030_v61 = vpop.f32.mrb[28].mxu0  ;;  %v3003_v62 = vpop.f32.mrb[25].mxu1 }
 0x235   : > { %v5707_v3 = vadd.f32 %v5706_v43, %v5672_v56  ;;  %v5820_v46 = vadd.f32 %v5819_v42, %v5785_v58  ;;  %v7077_v16 = vadd.f32 %v5279_v47, %v3003_v62  ;;  %v5295_v34 = vpop.f32.mrb[29].mxu0  ;;  %v6819_v49 = vpop.f32.mrb[26].mxu1 }
 0x236   : > { %v7078_v2 = vadd.f32 %v7027_v38, %v6819_v49  ;;  %v7031_v5 = vpop.f32.mrb[30].mxu0  ;;  %v3006_v22 = vpop.f32.mrb[27].mxu1  ;;  %v5676_v8 = vmul.f32 %v7076_v12, %v5603_v14 }
 0x237   : > { %v5821_v4 = vadd.f32 %v5820_v46, %v5786_v19  ;;  %v5674_v40 = vmul.f32 %v7077_v16, %v8591_v45  ;;  %v5708_v51 = vadd.f32 %v5707_v3, %v5673_v41  ;;  %v7079_v6 = vadd.f32 %v5282_v31, %v3006_v22  ;;  %v5298_v7 = vpop.f32.mrb[31].mxu0  ;;  %v5638_v43 = vpop.permute.xlu1 %5637 }
 0x238   : > { %v5677_v11 = vmul.f32 %v7078_v2, %v5608_v17  ;;  %v5790_v45 = vmul.f32 %v7076_v12, %v5676_v8 }
 0x239   : > { %v5709_v9 = vadd.f32 %v5708_v51, %v5674_v40  ;;  %v5788_v10 = vmul.f32 %v7077_v16, %v5674_v40  ;;  %v5822_v50 = vadd.f32 %v5821_v4, %v5787_v1  ;;  %v5675_v13 = vmul.f32 %v7079_v6, %v8593_v63 }
 0x23a   : > { %v5791_v47 = vmul.f32 %v7078_v2, %v5677_v11 }
 0x23b   : > { %v5823_v54 = vadd.f32 %v5822_v50, %v5788_v10  ;;  %v5710_v18 = vadd.f32 %v5709_v9, %v5675_v13  ;;  %v5789_v53 = vmul.f32 %v7079_v6, %v5675_v13  ;;  %v6822_v24 = vpop.f32.mrb[28].mxu1  ;;  %v5648_v6 = vpop.permute.xlu1 %5647 }
 0x23c   : > { %v7080_v20 = vadd.f32 %v7030_v61, %v6822_v24  ;;  %v7034_v59 = vpop.f32.mrb[32].mxu0  ;;  %v3019_v21 = vpop.f32.mrb[29].mxu1 }
 0x23d   : > { %v5711_v33 = vadd.f32 %v5710_v18, %v5676_v8  ;;  %v5824_v55 = vadd.f32 %v5823_v54, %v5789_v53  ;;  %v7081_v60 = vadd.f32 %v5295_v34, %v3019_v21  ;;  %v5311_v14 = vpop.f32.mrb[33].mxu0  ;;  %v6823_v25 = vpop.f32.mrb[30].mxu1 }
 0x23e   : > { %v7082_v26 = vadd.f32 %v7031_v5, %v6823_v25  ;;  %v7035_v27 = vpop.f32.mrb[34].mxu0  ;;  %v3022_v63 = vpop.f32.mrb[31].mxu1  ;;  %v5680_v48 = vmul.f32 %v7080_v20, %v5623_v52 }
 0x23f   : > { %v5825_v28 = vadd.f32 %v5824_v55, %v5790_v45  ;;  %v5678_v17 = vmul.f32 %v7081_v60, %v5613_v39  ;;  %v5712_v38 = vadd.f32 %v5711_v33, %v5677_v11  ;;  %v7083_v23 = vadd.f32 %v5298_v7, %v3022_v63  ;;  %v5314_v29 = vpop.f32.mrb[35].mxu0  ;;  %v5643_v34 = vpop.permute.xlu0 %5642 }
 0x240   : > { %v5681_v36 = vmul.f32 %v7082_v26, %v5628_v15  ;;  %v5794_v12 = vmul.f32 %v7080_v20, %v5680_v48 }
 0x241   : > { %v5713_v32 = vadd.f32 %v5712_v38, %v5678_v17  ;;  %v5792_v31 = vmul.f32 %v7081_v60, %v5678_v17  ;;  %v5826_v56 = vadd.f32 %v5825_v28, %v5791_v47  ;;  %v5679_v35 = vmul.f32 %v7083_v23, %v5618_v0 }
 0x242   : > { %v5795_v3 = vmul.f32 %v7082_v26, %v5681_v36 }
 0x243   : > { %v5827_v37 = vadd.f32 %v5826_v56, %v5792_v31  ;;  %v5714_v57 = vadd.f32 %v5713_v32, %v5679_v35  ;;  %v5793_v41 = vmul.f32 %v7083_v23, %v5679_v35  ;;  %v6826_v42 = vpop.f32.mrb[32].mxu1 }
 0x244   : > { %v7084_v58 = vadd.f32 %v7034_v59, %v6826_v42  ;;  %v3035_v44 = vpop.f32.mrb[33].mxu1 }
 0x245   : > { %v5715_v61 = vadd.f32 %v5714_v57, %v5680_v48  ;;  %v5828_v39 = vadd.f32 %v5827_v37, %v5793_v41  ;;  %v7085_v62 = vadd.f32 %v5311_v14, %v3035_v44  ;;  %v6827_v19 = vpop.f32.mrb[34].mxu1 }
 0x246   : > { %v7086_v46 = vadd.f32 %v7035_v27, %v6827_v19  ;;  %v3038_v16 = vpop.f32.mrb[35].mxu1  ;;  %v5684_v5 = vmul.f32 %v7084_v58, %v5643_v34 }
 0x247   : > { %v5829_v49 = vadd.f32 %v5828_v39, %v5794_v12  ;;  %v5682_v1 = vmul.f32 %v7085_v62, %v5633_v30  ;;  %v5716_v0 = vadd.f32 %v5715_v61, %v5681_v36  ;;  %v7087_v2 = vadd.f32 %v5314_v29, %v3038_v16 }
 0x248   : > { %v5685_v8 = vmul.f32 %v7086_v46, %v5648_v6  ;;  %v5798_v50 = vmul.f32 %v7084_v58, %v5684_v5 }
 0x249   : > { %v5717_v22 = vadd.f32 %v5716_v0, %v5682_v1  ;;  %v5796_v4 = vmul.f32 %v7085_v62, %v5682_v1  ;;  %v5830_v40 = vadd.f32 %v5829_v49, %v5795_v3  ;;  %v5683_v51 = vmul.f32 %v7087_v2, %v5638_v43 }
 0x24a   : > { %v5799_v11 = vmul.f32 %v7086_v46, %v5685_v8 }
 0x24b   : > { %v5831_v7 = vadd.f32 %v5830_v40, %v5796_v4  ;;  %v5718_v9 = vadd.f32 %v5717_v22, %v5683_v51  ;;  %v5797_v10 = vmul.f32 %v7087_v2, %v5683_v51 }
 0x24d   : > { %v5719_v13 = vadd.f32 %v5718_v9, %v5684_v5  ;;  %v5832_v52 = vadd.f32 %v5831_v7, %v5797_v10 }
 0x24f   : > { %v5720_v15 = vadd.f32 %v5719_v13, %v5685_v8  ;;  %v5833_v54 = vadd.f32 %v5832_v52, %v5798_v50 }
 0x251   : > { %v5721_v18 = vrot.slane %v5720_v15, 4  ;;  %v5834_v53 = vadd.f32 %v5833_v54, %v5799_v11 }
 0x253   : > { %v5835_v24 = vrot.slane %v5834_v53, 4  ;;  %v5722_v20 = vadd.f32 %v5721_v18, %v5720_v15 }
 0x255   : > { %v5723_v59 = vrot.slane %v5722_v20, 2  ;;  %v5836_v21 = vadd.f32 %v5835_v24, %v5834_v53 }
 0x257   : > { %v5724_v45 = vadd.f32 %v5723_v59, %v5722_v20  ;;  %v5837_v33 = vrot.slane %v5836_v21, 2 }
 0x259   : > { %v5725_v55 = vrot.slane %v5724_v45, 1  ;;  %v5838_v60 = vadd.f32 %v5837_v33, %v5836_v21 }
 0x25b   : > { %v5726_v14 = vadd.f32 %v5725_v55, %v5724_v45  ;;  %v5839_v25 = vrot.slane %v5838_v60, 1 }
 0x25d   : > { %5727 = vst [vmem:[%s193_s14] sm:$0x1] %v5726_v14  ;;  %v5840_v47 = vadd.f32 %v5839_v25, %v5838_v60 }
 0x25e   : > { %7651 = shalt.err (!%p7648_p3)
}
 0x25f   : > { %s7652_s11 = scalar_lea.hbm %s8614_s29, 16  ;;  %s7656_s27 = scalar_lea.hbm %s8691_s3, 32 }
 0x260   : > { %p7653_p4 = scmp.ne.s32.totalorder %s8614_s29, %s7652_s11  ;;  %p7657_p9 = scmp.lt.u32.totalorder %s8614_s29, %s8691_s3 }
 0x261   : > { %p7658_p10 = scmp.lt.u32.totalorder %s7656_s27, %s7652_s11  ;;  %p7660_p12 = scmp.lt.u32.totalorder %s7652_s11, %s8614_s29 }
 0x262   : > { %p7654_p7 = pnand %p7653_p4, %p7800_p5 }
 0x263   : > { %p7659_p11 = por %p7658_p10, %p7657_p9 }
 0x264   : > { %p7655_p8 = pneg %p7654_p7 }
 0x265   : > { %p7661_p13 = por %p7660_p12, %p7659_p11 }
 0x267   : > { %p7662_p0 = pnand %p7661_p13, %p7655_p8 }
 0x269   : > { %7665 = shalt.err (!%p7662_p0)
}
 0x26a   : > { %7341 = dma.vmem_to_hbm [thread:$0]  (%p7800_p5), %s8616_s20, 16, %s8614_s29, %s5843_s6   ;;  %5841 = vst [vmem:[%s199_s22] sm:$0x1] %v5840_v47 }
 0x26b   : > { %s5847_s30 = scalar_lea.sflag [#allocation6], %s8604_s12  ;;  %s7666_s7 = scalar_lea.vmem %s8623_s23, 16 }
 0x26c   : > { %p7667_p1 = scmp.ne.s32.totalorder %s8623_s23, %s7666_s7  ;;  %s7736_s8 = smov [#allocation5]  }
 0x26d   : > { %s7670_s9 = sshll.u32 %s7736_s8, 4  ;;  %s7671_s9 = int_to_ptr.vmem [resolvable:$false] %s7670_s9 }
 0x26e   : > { %p7668_p2 = pnand %p7667_p1, %p7800_p5  ;;  %s7672_s10 = scalar_lea.vmem %s7671_s9, 32 }
 0x26f   : > { %p7673_p4 = scmp.lt.s32.totalorder %s8623_s23, %s7671_s9  ;;  %p7674_p7 = scmp.lt.s32.totalorder %s7672_s10, %s7666_s7 }
 0x270   : > { %p7669_p3 = pneg %p7668_p2 }
 0x271   : > { %p7675_p8 = por %p7674_p7, %p7673_p4 }
 0x273   : > { %p7676_p9 = pnand %p7675_p8, %p7669_p3 }
 0x275   : > { %7679 = shalt.err (!%p7676_p9)
}
 0x276   : > { %s7680_s12 = scalar_lea.hbm %s8621_s5, 16  ;;  %s7684_s29 = scalar_lea.hbm %s8692_s4, 32 }
 0x277   : > { %p7681_p10 = scmp.ne.s32.totalorder %s8621_s5, %s7680_s12  ;;  %p7685_p13 = scmp.lt.u32.totalorder %s8621_s5, %s8692_s4 }
 0x278   : > { %p7686_p0 = scmp.lt.u32.totalorder %s7684_s29, %s7680_s12  ;;  %p7688_p2 = scmp.lt.u32.totalorder %s7680_s12, %s8621_s5 }
 0x279   : > { %p7682_p11 = pnand %p7681_p10, %p7800_p5 }
 0x27a   : > { %p7687_p1 = por %p7686_p0, %p7685_p13 }
 0x27b   : > { %p7683_p12 = pneg %p7682_p11 }
 0x27c   : > { %p7689_p3 = por %p7688_p2, %p7687_p1 }
 0x27e   : > { %p7690_p4 = pnand %p7689_p3, %p7683_p12 }
 0x280   : > { %7693 = shalt.err (!%p7690_p4)
}
 0x281   : > { %7342 = dma.vmem_to_hbm [thread:$0]  (%p7800_p5), %s8623_s23, 16, %s8621_s5, %s5847_s30  }
 0x282 PF: > { %p7352_p7 = scmp.ge.s32.totalorder %s7732_s18, 2  ;;  %s5884_s13 = sand.u32 1, %s7720_s15  }
 0x283   : > { %s5885_s14 = scalar_lea.sflag [#allocation4], %s5884_s13 }
 0x284   : > { %p7346_p8 = pnand %p7352_p7, %p7804_p6 }
 0x286   : > { %7711 = dma.done.wait (!%p7346_p8), %s5885_s14, 16  }
 0x287   : > { %7713 = vsyncadd (!%p7346_p8), %s5885_s14, 4294967280  ;;  %s5893_s27 = scalar_lea.sflag [#allocation6], %s5884_s13 }
 0x288   : > { %7715 = dma.done.wait (!%p7346_p8), %s5893_s27, 16  }
 0x289   : > { %7717 = vsyncadd (!%p7346_p8), %s5893_s27, 4294967280  ;;  %p18_p5 = scmp.ge.s32.totalorder %s7787_s21, 4   ;;  %s8695_s15 = smov %s7724_s16 }
 0x28a   : > { %s8696_s16 = smov %s7728_s17  ;;  %s8697_s17 = smov %s7798_s24 }
 0x28b   : > { %s8698_s18 = smov %s7787_s21  ;;  %20 = sbr.rel (!%p18_p5) target bundleno = 5 (0x5), region = 92 }
 0x292   :  { %5897 = vsyncpa [#allocation4], 1 }
 0x293   :  { %5899 = vsyncpa [#allocation4 + $0x1], 1 }
 0x294   :  { %5900 = vsyncpa [#allocation6], 1 }
 0x295   :  { %5902 = vsyncpa [#allocation6 + $0x1], 1 }

</bundles_post_ra>
